<compile_context>
chip_gen: v7x
topology: tpu7x:2x2x1
jax: 0.10.0
libtpu: 0.0.40
codegen_flags: <defaults>
</compile_context>

<pallas_src>
import numpy as np
import jax
import jax.numpy as jnp
from jax.experimental import pallas as pl
from jax.experimental.pallas import tpu as pltpu

_LANE = 128
_SUB = 8


def _round_up(x, m):
    return ((x + m - 1) // m) * m


def _cdiv(a, b):
    return -(-a // b)


def _vmem_capacity_bytes():
    """Physical per-core VMEM (v5e/v6e: 128 MiB, v7x: 64 MiB); conservative fallback."""
    try:
        info = pltpu.get_tpu_info()
        cap = getattr(info, "vmem_capacity_bytes", None)
        if cap:
            return int(cap)
    except Exception:
        pass
    return 64 * 1024 * 1024


def _per_elem_vmem_bytes(seq_q, seq_kv, h):
    """Conservative per-batch-element VMEM footprint (bytes): double-buffered
    in/out blocks plus in-kernel intermediates, including the lane padding
    Mosaic applies when h < 128 (every row occupies ceil(h/128)*128 lanes)."""
    h_lane = _round_up(h, _LANE)
    h_sub = _round_up(h, _SUB)
    blk_in = 2 * (seq_q + seq_kv) * h_lane * 2        # bf16 input blocks, 2 buffers
    blk_out = 2 * seq_q * h_lane * 4                  # f32 output block, 2 buffers
    qkv = (seq_q + 2 * seq_kv) * h_lane * (4 + 2)     # f32 q/k/v + bf16 MXU copies
    gram = h_sub * h_lane * (4 + 4 + 2)               # gram, masked gram, bf16 copy
    out_tmp = seq_q * h_lane * 4                      # result before the store
    return blk_in + blk_out + qkv + gram + out_tmp


def _choose_tiling(B, per_elem_bytes, const_bytes, vmem_cap):
    """Pick (batch_tile, padded_B, num_steps).

    The tile is sized so everything fits in ~50% of per-core VMEM.  When the
    batch is worth splitting we prefer an even number of grid steps >= 4 so a
    2-TensorCore chip (v7x) gets >= 2 pipelined steps per core, padding B up to
    a sublane-aligned multiple of the tile when needed."""
    budget = max(vmem_cap // 2 - const_bytes, per_elem_bytes)
    bt_cap = int(max(_SUB, min(budget // per_elem_bytes, 512)))
    if B <= 16:
        return B, B, 1                     # single step, block == whole array
    best = None
    for num in range(2, 65, 2):
        bt = _round_up(_cdiv(B, num), _SUB)
        if bt > bt_cap:
            continue
        pad = num * bt - B
        key = (pad, 0 if num >= 4 else 1, num)   # least padding, prefer >= 4 steps
        if best is None or key < best[0]:
            best = (key, bt, num)
    if best is None:                       # VMEM budget forces tiles < B/64
        bt = max(_SUB, bt_cap // _SUB * _SUB)
        num = _cdiv(B, bt)
        num += num % 2
        best = (None, bt, num)
    _, bt, num = best
    return bt, bt * num, num


def make_mha_kernel(h, seq_q, seq_kv, bt, n_heads, flat_out):
    head_dim = h // n_heads
    # Full (h,h) Gram + block-diagonal mask while head_dim < 128 (no 8-lane
    # head slicing); per-head Grams once head_dim is lane-aligned, which cuts
    # both MXU work and the (bt, h, h) intermediate by n_heads.
    per_head = (head_dim % _LANE == 0) and n_heads > 1
    inv_scale = float(1.0 / np.sqrt(h))
    cdt = jnp.bfloat16

    def kernel(xq_ref, xkv_ref, wq_ref, wk_ref, wv_ref,
               bq_ref, bk_ref, bv_ref, mask_ref, out_ref):
        # Batch tile flattened into the matmul M dimension (leading-dim merge,
        # layout preserving): each projection is one MXU matmul with bf16
        # operands and f32 accumulation; bias add in f32.
        xq2 = xq_ref[...].reshape(bt * seq_q, h)
        xkv2 = xkv_ref[...].reshape(bt * seq_kv, h)
        q2 = jnp.dot(xq2, wq_ref[...], preferred_element_type=jnp.float32) + bq_ref[...]
        k2 = jnp.dot(xkv2, wk_ref[...], preferred_element_type=jnp.float32) + bk_ref[...]
        v2 = jnp.dot(xkv2, wv_ref[...], preferred_element_type=jnp.float32) + bv_ref[...]

        q = q2.reshape(bt, seq_q, h)
        k = k2.reshape(bt, seq_kv, h)
        v = v2.reshape(bt, seq_kv, h)

        if per_head:
            # TODO(synk): only reached for head_dim >= 128; validate the
            # two-batch-dim einsum lowering on real production shapes.
            qh = q.reshape(bt, seq_q, n_heads, head_dim).astype(cdt)
            kh = k.reshape(bt, seq_kv, n_heads, head_dim).astype(cdt)
            vh = v.reshape(bt, seq_kv, n_heads, head_dim).astype(cdt)
            gram = jnp.einsum('bsnd,bsne->bnde', kh, vh,
                              preferred_element_type=jnp.float32) * inv_scale
            out = jnp.einsum('bqnd,bnde->bqne', qh, gram.astype(cdt),
                             preferred_element_type=jnp.float32)
            out = out.reshape(bt, seq_q, h)
        else:
            # No softmax -> attention is linear, so per head
            #   (Q_h K_h^T / sqrt(h)) V_h == Q_h (K_h^T V_h / sqrt(h))
            # and all heads collapse into one (h, h) Gram masked
            # block-diagonally; mask_ref already carries the 1/sqrt(h) scale.
            gram = jnp.einsum('bkd,bke->bde', k.astype(cdt), v.astype(cdt),
                              preferred_element_type=jnp.float32)
            m = gram * mask_ref[...][None, :, :]
            out = jnp.einsum('bqd,bde->bqe', q.astype(cdt), m.astype(cdt),
                             preferred_element_type=jnp.float32)

        if flat_out:
            # Lane-dense store: one unmasked (bt, seq_q*h) slab instead of
            # seq_q sublane rows with only h (<128) live lanes each.
            out_ref[...] = out.reshape(bt, seq_q * h).astype(out_ref.dtype)
        else:
            out_ref[...] = out.astype(out_ref.dtype)

    return kernel


def multi_head_attention(q, kv, params, n_heads, batch_tile=None):
    """q: (b1, b2, Sq, h); kv: (b1, b2, Skv, h) or None; returns (b1, b2, Sq, h) f32."""
    if kv is None:
        kv = q
    b1, b2, seq_q, h = q.shape
    _, _, seq_kv, _ = kv.shape
    B = b1 * b2
    head_dim = h // n_heads
    in_dt = jnp.bfloat16
    in_bytes = 2

    vmem_cap = _vmem_capacity_bytes()
    h_lane = _round_up(h, _LANE)
    # W/b/mask are grid-constant but the default pipeline still double-buffers
    # them; charge that to the budget instead of relying on pl.Buffered(1).
    const_bytes = 2 * (3 * h * h_lane * in_bytes + 3 * h_lane * 4 + h * h_lane * 4)
    per_elem = _per_elem_vmem_bytes(seq_q, seq_kv, h)

    if batch_tile is None:
        bt, B_pad, num_tiles = _choose_tiling(B, per_elem, const_bytes, vmem_cap)
    else:
        bt = int(batch_tile)
        num_tiles = _cdiv(B, bt)
        B_pad = num_tiles * bt
        assert bt == B_pad or bt % _SUB == 0, "batch_tile must be sublane (8) aligned"

    xq = q.reshape(B, seq_q, h).astype(in_dt)
    xkv = kv.reshape(B, seq_kv, h).astype(in_dt)
    if B_pad != B:
        xq = jnp.pad(xq, ((0, B_pad - B), (0, 0), (0, 0)))
        xkv = jnp.pad(xkv, ((0, B_pad - B), (0, 0), (0, 0)))

    # PyTorch Linear weight is (out, in); the kernel wants (in, out).
    wq_t = params["Wq"].T.astype(in_dt)
    wk_t = params["Wk"].T.astype(in_dt)
    wv_t = params["Wv"].T.astype(in_dt)
    bq = params["bq"].reshape(1, h).astype(jnp.float32)
    bk = params["bk"].reshape(1, h).astype(jnp.float32)
    bv = params["bv"].reshape(1, h).astype(jnp.float32)

    # Block-diagonal head mask with the 1/sqrt(h) attention scale folded in.
    mask_np = np.zeros((h, h), dtype=np.float32)
    for i in range(n_heads):
        s = i * head_dim
        mask_np[s:s + head_dim, s:s + head_dim] = 1.0 / np.sqrt(h)
    mask = jnp.asarray(mask_np)

    flops = 2 * B_pad * ((seq_q + 2 * seq_kv) * h * h   # projections
                         + seq_kv * h * h               # K^T V Gram
                         + seq_q * h * h)               # Q @ (mask * Gram)
    bytes_accessed = (B_pad * (seq_q + seq_kv) * h * in_bytes
                      + 3 * h * h * in_bytes + (3 * h + h * h) * 4
                      + B_pad * seq_q * h * 4)
    cost = pl.CostEstimate(flops=int(flops), transcendentals=0,
                           bytes_accessed=int(bytes_accessed))
    vmem_limit = int(max(32 << 20, min(vmem_cap * 3 // 4, 96 << 20)))

    def build(flat_out):
        kernel = make_mha_kernel(h, seq_q, seq_kv, bt, n_heads, flat_out)
        if flat_out:
            out_shape = jax.ShapeDtypeStruct((B_pad, seq_q * h), jnp.float32)
            out_spec = pl.BlockSpec((bt, seq_q * h), lambda t: (t, 0))
        else:
            out_shape = jax.ShapeDtypeStruct((B_pad, seq_q, h), jnp.float32)
            out_spec = pl.BlockSpec((bt, seq_q, h), lambda t: (t, 0, 0))

        def bcast2d(shape):
            return pl.BlockSpec(shape, lambda t: (0, 0))

        return pl.pallas_call(
            kernel,
            out_shape=out_shape,
            grid_spec=pltpu.PrefetchScalarGridSpec(
                num_scalar_prefetch=0,
                grid=(num_tiles,),
                in_specs=[
                    pl.BlockSpec((bt, seq_q, h), lambda t: (t, 0, 0)),
                    pl.BlockSpec((bt, seq_kv, h), lambda t: (t, 0, 0)),
                    bcast2d((h, h)),   # Wq
                    bcast2d((h, h)),   # Wk
                    bcast2d((h, h)),   # Wv
                    bcast2d((1, h)),   # bq
                    bcast2d((1, h)),   # bk
                    bcast2d((1, h)),   # bv
                    bcast2d((h, h)),   # scaled block-diagonal head mask
                ],
                out_specs=out_spec,
            ),
            compiler_params=pltpu.CompilerParams(
                dimension_semantics=("parallel",),
                vmem_limit_bytes=vmem_limit,
            ),
            cost_estimate=cost,
        )

    args = (xq, xkv, wq_t, wk_t, wv_t, bq, bk, bv, mask)
    out = None
    if h % _LANE != 0:
        # Prefer the lane-dense (bt, seq*h) store; fall back to the proven 3-D
        # store if this toolchain cannot lower the last-two-dim merge reshape.
        try:
            out = build(True)(*args).reshape(B_pad, seq_q, h)
        except Exception:
            out = None
    if out is None:
        out = build(False)(*args)

    return out[:B].reshape(b1, b2, seq_q, h)


def reference_mha(q, kv, params, n_heads):
    """Pure-JAX (f32) transcription of the PyTorch forward (incl. reperm logic)."""
    if kv is None:
        kv = q
    h = q.shape[-1]
    head_dim = h // n_heads

    def linear(x, W, b):
        return x @ W.T + b

    def reperm(x, src, perm, dst):
        return jnp.transpose(x.reshape(src), perm).reshape(dst)

    b1k, b2k, seq_k, _ = kv.shape
    perm = (3, 0, 1, 2, 4)
    src = (b1k, b2k, seq_k, n_heads, head_dim)
    dst = (b1k * b2k * n_heads, seq_k, head_dim)
    k = reperm(linear(kv, params["Wk"], params["bk"]), src, perm, dst)
    v = reperm(linear(kv, params["Wv"], params["bv"]), src, perm, dst)

    b1, b2, seq_q, _ = q.shape
    src = (b1, b2, seq_q, n_heads, head_dim)
    dst = (b1 * b2 * n_heads, seq_q, head_dim)
    qp = reperm(linear(q, params["Wq"], params["bq"]), src, perm, dst)

    scale = np.sqrt(h)
    QK = jnp.matmul(qp, jnp.swapaxes(k, -2, -1)) / scale
    attn = jnp.matmul(QK, v)

    perm = (1, 2, 0, 3)
    src = (n_heads, b1 * b2, seq_q, head_dim)
    dst = (b1, b2, seq_q, head_dim * n_heads)
    return reperm(attn, src, perm, dst)


if __name__ == "__main__":
    b1, b2, seq, h, n_heads = 2, 2, 8, 32, 4

    key = jax.random.PRNGKey(0)
    kx, kq, kk, kv_, kbq, kbk, kbv = jax.random.split(key, 7)

    x = jax.random.normal(kx, (b1, b2, seq, h), dtype=jnp.float32)
    params = {
        "Wq": jax.random.normal(kq, (h, h), dtype=jnp.float32) * 0.1,
        "Wk": jax.random.normal(kk, (h, h), dtype=jnp.float32) * 0.1,
        "Wv": jax.random.normal(kv_, (h, h), dtype=jnp.float32) * 0.1,
        "bq": jax.random.normal(kbq, (h,), dtype=jnp.float32) * 0.1,
        "bk": jax.random.normal(kbk, (h,), dtype=jnp.float32) * 0.1,
        "bv": jax.random.normal(kbv, (h,), dtype=jnp.float32) * 0.1,
    }

    out = multi_head_attention(x, None, params, n_heads)
    out = jax.block_until_ready(out)

    ref = reference_mha(x, None, params, n_heads)
    assert out.shape == (b1, b2, seq, h)
    # bf16 MXU operands (f32 accumulate) + the exact Q@(K^T V) reassociation vs
    # the f32 (Q K^T)@V reference: tolerance sized for bf16 rounding.
    np.testing.assert_allclose(np.asarray(out), np.asarray(ref),
                               rtol=3e-2, atol=3e-2)
    print("KERNEL_OK")
</pallas_src>

<mosaic_0001>
module attributes {stable_mosaic.version = 11 : i64} {
  func.func @kernel(%arg0: i32, %arg1: memref<4x8x32xbf16, #tpu.memory_space<vmem>>, %arg2: memref<4x8x32xbf16, #tpu.memory_space<vmem>>, %arg3: memref<32x32xbf16, #tpu.memory_space<vmem>>, %arg4: memref<32x32xbf16, #tpu.memory_space<vmem>>, %arg5: memref<32x32xbf16, #tpu.memory_space<vmem>>, %arg6: memref<1x32xf32, #tpu.memory_space<vmem>>, %arg7: memref<1x32xf32, #tpu.memory_space<vmem>>, %arg8: memref<1x32xf32, #tpu.memory_space<vmem>>, %arg9: memref<32x32xf32, #tpu.memory_space<vmem>>, %arg10: memref<4x256xf32, #tpu.memory_space<vmem>>) attributes {dimension_semantics = [#tpu.dimension_semantics<parallel>], iteration_bounds = array<i64: 1>, scalar_prefetch = 0 : i64, scratch_operands = 0 : i64, tpu.core_type = #tpu.core_type<tc>, window_params = [{transform_indices = @transform_0, window_bounds = array<i64: 4, 8, 32>}, {transform_indices = @transform_1, window_bounds = array<i64: 4, 8, 32>}, {pipeline_mode = #tpu.pipeline_mode<synchronous>, transform_indices = @transform_2, window_bounds = array<i64: 32, 32>}, {pipeline_mode = #tpu.pipeline_mode<synchronous>, transform_indices = @transform_3, window_bounds = array<i64: 32, 32>}, {pipeline_mode = #tpu.pipeline_mode<synchronous>, transform_indices = @transform_4, window_bounds = array<i64: 32, 32>}, {pipeline_mode = #tpu.pipeline_mode<synchronous>, transform_indices = @transform_5, window_bounds = array<i64: 1, 32>}, {pipeline_mode = #tpu.pipeline_mode<synchronous>, transform_indices = @transform_6, window_bounds = array<i64: 1, 32>}, {pipeline_mode = #tpu.pipeline_mode<synchronous>, transform_indices = @transform_7, window_bounds = array<i64: 1, 32>}, {pipeline_mode = #tpu.pipeline_mode<synchronous>, transform_indices = @transform_8, window_bounds = array<i64: 32, 32>}, {transform_indices = @transform_9, window_bounds = array<i64: 4, 256>}]} {
    %c0 = arith.constant 0 : index
    %c0_0 = arith.constant 0 : index
    %c0_1 = arith.constant 0 : index
    %0 = vector.load %arg1[%c0, %c0_0, %c0_1] : memref<4x8x32xbf16, #tpu.memory_space<vmem>>, vector<4x8x32xbf16>
    %1 = vector.shape_cast %0 : vector<4x8x32xbf16> to vector<32x32xbf16>
    %c0_2 = arith.constant 0 : index
    %c0_3 = arith.constant 0 : index
    %c0_4 = arith.constant 0 : index
    %2 = vector.load %arg2[%c0_2, %c0_3, %c0_4] : memref<4x8x32xbf16, #tpu.memory_space<vmem>>, vector<4x8x32xbf16>
    %3 = vector.shape_cast %2 : vector<4x8x32xbf16> to vector<32x32xbf16>
    %c0_5 = arith.constant 0 : index
    %c0_6 = arith.constant 0 : index
    %4 = vector.load %arg3[%c0_5, %c0_6] : memref<32x32xbf16, #tpu.memory_space<vmem>>, vector<32x32xbf16>
    %cst = arith.constant dense<0.000000e+00> : vector<32x32xf32>
    %5 = tpu.matmul %1, %4, %cst {dimension_numbers = #tpu.dot_dimension_numbers<[1], [0], [0], [1], [0, 0, 1, 1], [], []>} : vector<32x32xbf16>, vector<32x32xbf16>, vector<32x32xf32> -> vector<32x32xf32>
    %c0_7 = arith.constant 0 : index
    %c0_8 = arith.constant 0 : index
    %6 = vector.load %arg6[%c0_7, %c0_8] : memref<1x32xf32, #tpu.memory_space<vmem>>, vector<1x32xf32>
    %7 = vector.broadcast %6 : vector<1x32xf32> to vector<32x32xf32>
    %8 = arith.addf %5, %7 : vector<32x32xf32>
    %c0_9 = arith.constant 0 : index
    %c0_10 = arith.constant 0 : index
    %9 = vector.load %arg4[%c0_9, %c0_10] : memref<32x32xbf16, #tpu.memory_space<vmem>>, vector<32x32xbf16>
    %cst_11 = arith.constant dense<0.000000e+00> : vector<32x32xf32>
    %10 = tpu.matmul %3, %9, %cst_11 {dimension_numbers = #tpu.dot_dimension_numbers<[1], [0], [0], [1], [0, 0, 1, 1], [], []>} : vector<32x32xbf16>, vector<32x32xbf16>, vector<32x32xf32> -> vector<32x32xf32>
    %c0_12 = arith.constant 0 : index
    %c0_13 = arith.constant 0 : index
    %11 = vector.load %arg7[%c0_12, %c0_13] : memref<1x32xf32, #tpu.memory_space<vmem>>, vector<1x32xf32>
    %12 = vector.broadcast %11 : vector<1x32xf32> to vector<32x32xf32>
    %13 = arith.addf %10, %12 : vector<32x32xf32>
    %c0_14 = arith.constant 0 : index
    %c0_15 = arith.constant 0 : index
    %14 = vector.load %arg5[%c0_14, %c0_15] : memref<32x32xbf16, #tpu.memory_space<vmem>>, vector<32x32xbf16>
    %cst_16 = arith.constant dense<0.000000e+00> : vector<32x32xf32>
    %15 = tpu.matmul %3, %14, %cst_16 {dimension_numbers = #tpu.dot_dimension_numbers<[1], [0], [0], [1], [0, 0, 1, 1], [], []>} : vector<32x32xbf16>, vector<32x32xbf16>, vector<32x32xf32> -> vector<32x32xf32>
    %c0_17 = arith.constant 0 : index
    %c0_18 = arith.constant 0 : index
    %16 = vector.load %arg8[%c0_17, %c0_18] : memref<1x32xf32, #tpu.memory_space<vmem>>, vector<1x32xf32>
    %17 = vector.broadcast %16 : vector<1x32xf32> to vector<32x32xf32>
    %18 = arith.addf %15, %17 : vector<32x32xf32>
    %19 = vector.shape_cast %8 : vector<32x32xf32> to vector<4x8x32xf32>
    %20 = vector.shape_cast %13 : vector<32x32xf32> to vector<4x8x32xf32>
    %21 = vector.shape_cast %18 : vector<32x32xf32> to vector<4x8x32xf32>
    %22 = arith.truncf %20 : vector<4x8x32xf32> to vector<4x8x32xbf16>
    %23 = arith.truncf %21 : vector<4x8x32xf32> to vector<4x8x32xbf16>
    "tpu.trace_start"() <{level = 10 : i32, message = "bkd,bke->bde"}> : () -> ()
    %cst_19 = arith.constant dense<0.000000e+00> : vector<4x32x32xf32>
    %24 = tpu.matmul %22, %23, %cst_19 {dimension_numbers = #tpu.dot_dimension_numbers<[1], [1], [2], [2], [0, 0, 0, 2, 1, 2], [0], [0]>} : vector<4x8x32xbf16>, vector<4x8x32xbf16>, vector<4x32x32xf32> -> vector<4x32x32xf32>
    "tpu.trace_stop"() : () -> ()
    %c0_20 = arith.constant 0 : index
    %c0_21 = arith.constant 0 : index
    %25 = vector.load %arg9[%c0_20, %c0_21] : memref<32x32xf32, #tpu.memory_space<vmem>>, vector<32x32xf32>
    %26 = vector.shape_cast %25 : vector<32x32xf32> to vector<1x32x32xf32>
    %27 = vector.broadcast %26 : vector<1x32x32xf32> to vector<4x32x32xf32>
    %28 = arith.mulf %24, %27 : vector<4x32x32xf32>
    %29 = arith.truncf %19 : vector<4x8x32xf32> to vector<4x8x32xbf16>
    %30 = arith.truncf %28 : vector<4x32x32xf32> to vector<4x32x32xbf16>
    "tpu.trace_start"() <{level = 10 : i32, message = "bqd,bde->bqe"}> : () -> ()
    %cst_22 = arith.constant dense<0.000000e+00> : vector<4x8x32xf32>
    %31 = tpu.matmul %29, %30, %cst_22 {dimension_numbers = #tpu.dot_dimension_numbers<[2], [1], [1], [2], [0, 0, 0, 1, 1, 2], [0], [0]>} : vector<4x8x32xbf16>, vector<4x32x32xbf16>, vector<4x8x32xf32> -> vector<4x8x32xf32>
    "tpu.trace_stop"() : () -> ()
    %32 = vector.shape_cast %31 : vector<4x8x32xf32> to vector<4x256xf32>
    %c0_23 = arith.constant 0 : index
    %c0_24 = arith.constant 0 : index
    %33 = vector.load %arg10[%c0_23, %c0_24] : memref<4x256xf32, #tpu.memory_space<vmem>>, vector<4x256xf32>
    tpu.vector_store %arg10[%c0_23, %c0_24], %32 {strides = array<i32>} : memref<4x256xf32, #tpu.memory_space<vmem>>, vector<4x256xf32>,
    return
  }
  func.func @transform_0(%arg0: i32) -> (i32, i32, i32) {
    %c0_i32 = arith.constant 0 : i32
    %c0_i32_0 = arith.constant 0 : i32
    %c0_i32_1 = arith.constant 0 : i32
    return %arg0, %c0_i32, %c0_i32_0 : i32, i32, i32
  }
  func.func @transform_1(%arg0: i32) -> (i32, i32, i32) {
    %c0_i32 = arith.constant 0 : i32
    %c0_i32_0 = arith.constant 0 : i32
    %c0_i32_1 = arith.constant 0 : i32
    return %arg0, %c0_i32, %c0_i32_0 : i32, i32, i32
  }
  func.func @transform_2(%arg0: i32) -> (i32, i32) {
    %c0_i32 = arith.constant 0 : i32
    %c0_i32_0 = arith.constant 0 : i32
    %c0_i32_1 = arith.constant 0 : i32
    return %c0_i32, %c0_i32_0 : i32, i32
  }
  func.func @transform_3(%arg0: i32) -> (i32, i32) {
    %c0_i32 = arith.constant 0 : i32
    %c0_i32_0 = arith.constant 0 : i32
    %c0_i32_1 = arith.constant 0 : i32
    return %c0_i32, %c0_i32_0 : i32, i32
  }
  func.func @transform_4(%arg0: i32) -> (i32, i32) {
    %c0_i32 = arith.constant 0 : i32
    %c0_i32_0 = arith.constant 0 : i32
    %c0_i32_1 = arith.constant 0 : i32
    return %c0_i32, %c0_i32_0 : i32, i32
  }
  func.func @transform_5(%arg0: i32) -> (i32, i32) {
    %c0_i32 = arith.constant 0 : i32
    %c0_i32_0 = arith.constant 0 : i32
    %c0_i32_1 = arith.constant 0 : i32
    return %c0_i32, %c0_i32_0 : i32, i32
  }
  func.func @transform_6(%arg0: i32) -> (i32, i32) {
    %c0_i32 = arith.constant 0 : i32
    %c0_i32_0 = arith.constant 0 : i32
    %c0_i32_1 = arith.constant 0 : i32
    return %c0_i32, %c0_i32_0 : i32, i32
  }
  func.func @transform_7(%arg0: i32) -> (i32, i32) {
    %c0_i32 = arith.constant 0 : i32
    %c0_i32_0 = arith.constant 0 : i32
    %c0_i32_1 = arith.constant 0 : i32
    return %c0_i32, %c0_i32_0 : i32, i32
  }
  func.func @transform_8(%arg0: i32) -> (i32, i32) {
    %c0_i32 = arith.constant 0 : i32
    %c0_i32_0 = arith.constant 0 : i32
    %c0_i32_1 = arith.constant 0 : i32
    return %c0_i32, %c0_i32_0 : i32, i32
  }
  func.func @transform_9(%arg0: i32) -> (i32, i32) {
    %c0_i32 = arith.constant 0 : i32
    %c0_i32_0 = arith.constant 0 : i32
    return %arg0, %c0_i32 : i32, i32
  }
}

module attributes {stable_mosaic.version = 11 : i64} {
  func.func @kernel(%arg0: i32, %arg1: memref<4x8x32xbf16, #tpu.memory_space<vmem>>, %arg2: memref<4x8x32xbf16, #tpu.memory_space<vmem>>, %arg3: memref<32x32xbf16, #tpu.memory_space<vmem>>, %arg4: memref<32x32xbf16, #tpu.memory_space<vmem>>, %arg5: memref<32x32xbf16, #tpu.memory_space<vmem>>, %arg6: memref<1x32xf32, #tpu.memory_space<vmem>>, %arg7: memref<1x32xf32, #tpu.memory_space<vmem>>, %arg8: memref<1x32xf32, #tpu.memory_space<vmem>>, %arg9: memref<32x32xf32, #tpu.memory_space<vmem>>, %arg10: memref<4x8x32xf32, #tpu.memory_space<vmem>>) attributes {dimension_semantics = [#tpu.dimension_semantics<parallel>], iteration_bounds = array<i64: 1>, scalar_prefetch = 0 : i64, scratch_operands = 0 : i64, tpu.core_type = #tpu.core_type<tc>, window_params = [{transform_indices = @transform_0, window_bounds = array<i64: 4, 8, 32>}, {transform_indices = @transform_1, window_bounds = array<i64: 4, 8, 32>}, {pipeline_mode = #tpu.pipeline_mode<synchronous>, transform_indices = @transform_2, window_bounds = array<i64: 32, 32>}, {pipeline_mode = #tpu.pipeline_mode<synchronous>, transform_indices = @transform_3, window_bounds = array<i64: 32, 32>}, {pipeline_mode = #tpu.pipeline_mode<synchronous>, transform_indices = @transform_4, window_bounds = array<i64: 32, 32>}, {pipeline_mode = #tpu.pipeline_mode<synchronous>, transform_indices = @transform_5, window_bounds = array<i64: 1, 32>}, {pipeline_mode = #tpu.pipeline_mode<synchronous>, transform_indices = @transform_6, window_bounds = array<i64: 1, 32>}, {pipeline_mode = #tpu.pipeline_mode<synchronous>, transform_indices = @transform_7, window_bounds = array<i64: 1, 32>}, {pipeline_mode = #tpu.pipeline_mode<synchronous>, transform_indices = @transform_8, window_bounds = array<i64: 32, 32>}, {transform_indices = @transform_9, window_bounds = array<i64: 4, 8, 32>}]} {
    %c0 = arith.constant 0 : index
    %c0_0 = arith.constant 0 : index
    %c0_1 = arith.constant 0 : index
    %0 = vector.load %arg1[%c0, %c0_0, %c0_1] : memref<4x8x32xbf16, #tpu.memory_space<vmem>>, vector<4x8x32xbf16>
    %1 = vector.shape_cast %0 : vector<4x8x32xbf16> to vector<32x32xbf16>
    %c0_2 = arith.constant 0 : index
    %c0_3 = arith.constant 0 : index
    %c0_4 = arith.constant 0 : index
    %2 = vector.load %arg2[%c0_2, %c0_3, %c0_4] : memref<4x8x32xbf16, #tpu.memory_space<vmem>>, vector<4x8x32xbf16>
    %3 = vector.shape_cast %2 : vector<4x8x32xbf16> to vector<32x32xbf16>
    %c0_5 = arith.constant 0 : index
    %c0_6 = arith.constant 0 : index
    %4 = vector.load %arg3[%c0_5, %c0_6] : memref<32x32xbf16, #tpu.memory_space<vmem>>, vector<32x32xbf16>
    %cst = arith.constant dense<0.000000e+00> : vector<32x32xf32>
    %5 = tpu.matmul %1, %4, %cst {dimension_numbers = #tpu.dot_dimension_numbers<[1], [0], [0], [1], [0, 0, 1, 1], [], []>} : vector<32x32xbf16>, vector<32x32xbf16>, vector<32x32xf32> -> vector<32x32xf32>
    %c0_7 = arith.constant 0 : index
    %c0_8 = arith.constant 0 : index
    %6 = vector.load %arg6[%c0_7, %c0_8] : memref<1x32xf32, #tpu.memory_space<vmem>>, vector<1x32xf32>
    %7 = vector.broadcast %6 : vector<1x32xf32> to vector<32x32xf32>
    %8 = arith.addf %5, %7 : vector<32x32xf32>
    %c0_9 = arith.constant 0 : index
    %c0_10 = arith.constant 0 : index
    %9 = vector.load %arg4[%c0_9, %c0_10] : memref<32x32xbf16, #tpu.memory_space<vmem>>, vector<32x32xbf16>
    %cst_11 = arith.constant dense<0.000000e+00> : vector<32x32xf32>
    %10 = tpu.matmul %3, %9, %cst_11 {dimension_numbers = #tpu.dot_dimension_numbers<[1], [0], [0], [1], [0, 0, 1, 1], [], []>} : vector<32x32xbf16>, vector<32x32xbf16>, vector<32x32xf32> -> vector<32x32xf32>
    %c0_12 = arith.constant 0 : index
    %c0_13 = arith.constant 0 : index
    %11 = vector.load %arg7[%c0_12, %c0_13] : memref<1x32xf32, #tpu.memory_space<vmem>>, vector<1x32xf32>
    %12 = vector.broadcast %11 : vector<1x32xf32> to vector<32x32xf32>
    %13 = arith.addf %10, %12 : vector<32x32xf32>
    %c0_14 = arith.constant 0 : index
    %c0_15 = arith.constant 0 : index
    %14 = vector.load %arg5[%c0_14, %c0_15] : memref<32x32xbf16, #tpu.memory_space<vmem>>, vector<32x32xbf16>
    %cst_16 = arith.constant dense<0.000000e+00> : vector<32x32xf32>
    %15 = tpu.matmul %3, %14, %cst_16 {dimension_numbers = #tpu.dot_dimension_numbers<[1], [0], [0], [1], [0, 0, 1, 1], [], []>} : vector<32x32xbf16>, vector<32x32xbf16>, vector<32x32xf32> -> vector<32x32xf32>
    %c0_17 = arith.constant 0 : index
    %c0_18 = arith.constant 0 : index
    %16 = vector.load %arg8[%c0_17, %c0_18] : memref<1x32xf32, #tpu.memory_space<vmem>>, vector<1x32xf32>
    %17 = vector.broadcast %16 : vector<1x32xf32> to vector<32x32xf32>
    %18 = arith.addf %15, %17 : vector<32x32xf32>
    %19 = vector.shape_cast %8 : vector<32x32xf32> to vector<4x8x32xf32>
    %20 = vector.shape_cast %13 : vector<32x32xf32> to vector<4x8x32xf32>
    %21 = vector.shape_cast %18 : vector<32x32xf32> to vector<4x8x32xf32>
    %22 = arith.truncf %20 : vector<4x8x32xf32> to vector<4x8x32xbf16>
    %23 = arith.truncf %21 : vector<4x8x32xf32> to vector<4x8x32xbf16>
    "tpu.trace_start"() <{level = 10 : i32, message = "bkd,bke->bde"}> : () -> ()
    %cst_19 = arith.constant dense<0.000000e+00> : vector<4x32x32xf32>
    %24 = tpu.matmul %22, %23, %cst_19 {dimension_numbers = #tpu.dot_dimension_numbers<[1], [1], [2], [2], [0, 0, 0, 2, 1, 2], [0], [0]>} : vector<4x8x32xbf16>, vector<4x8x32xbf16>, vector<4x32x32xf32> -> vector<4x32x32xf32>
    "tpu.trace_stop"() : () -> ()
    %c0_20 = arith.constant 0 : index
    %c0_21 = arith.constant 0 : index
    %25 = vector.load %arg9[%c0_20, %c0_21] : memref<32x32xf32, #tpu.memory_space<vmem>>, vector<32x32xf32>
    %26 = vector.shape_cast %25 : vector<32x32xf32> to vector<1x32x32xf32>
    %27 = vector.broadcast %26 : vector<1x32x32xf32> to vector<4x32x32xf32>
    %28 = arith.mulf %24, %27 : vector<4x32x32xf32>
    %29 = arith.truncf %19 : vector<4x8x32xf32> to vector<4x8x32xbf16>
    %30 = arith.truncf %28 : vector<4x32x32xf32> to vector<4x32x32xbf16>
    "tpu.trace_start"() <{level = 10 : i32, message = "bqd,bde->bqe"}> : () -> ()
    %cst_22 = arith.constant dense<0.000000e+00> : vector<4x8x32xf32>
    %31 = tpu.matmul %29, %30, %cst_22 {dimension_numbers = #tpu.dot_dimension_numbers<[2], [1], [1], [2], [0, 0, 0, 1, 1, 2], [0], [0]>} : vector<4x8x32xbf16>, vector<4x32x32xbf16>, vector<4x8x32xf32> -> vector<4x8x32xf32>
    "tpu.trace_stop"() : () -> ()
    %c0_23 = arith.constant 0 : index
    %c0_24 = arith.constant 0 : index
    %c0_25 = arith.constant 0 : index
    %32 = vector.load %arg10[%c0_23, %c0_24, %c0_25] : memref<4x8x32xf32, #tpu.memory_space<vmem>>, vector<4x8x32xf32>
    tpu.vector_store %arg10[%c0_23, %c0_24, %c0_25], %31 {strides = array<i32>} : memref<4x8x32xf32, #tpu.memory_space<vmem>>, vector<4x8x32xf32>,
    return
  }
  func.func @transform_0(%arg0: i32) -> (i32, i32, i32) {
    %c0_i32 = arith.constant 0 : i32
    %c0_i32_0 = arith.constant 0 : i32
    %c0_i32_1 = arith.constant 0 : i32
    return %arg0, %c0_i32, %c0_i32_0 : i32, i32, i32
  }
  func.func @transform_1(%arg0: i32) -> (i32, i32, i32) {
    %c0_i32 = arith.constant 0 : i32
    %c0_i32_0 = arith.constant 0 : i32
    %c0_i32_1 = arith.constant 0 : i32
    return %arg0, %c0_i32, %c0_i32_0 : i32, i32, i32
  }
  func.func @transform_2(%arg0: i32) -> (i32, i32) {
    %c0_i32 = arith.constant 0 : i32
    %c0_i32_0 = arith.constant 0 : i32
    %c0_i32_1 = arith.constant 0 : i32
    return %c0_i32, %c0_i32_0 : i32, i32
  }
  func.func @transform_3(%arg0: i32) -> (i32, i32) {
    %c0_i32 = arith.constant 0 : i32
    %c0_i32_0 = arith.constant 0 : i32
    %c0_i32_1 = arith.constant 0 : i32
    return %c0_i32, %c0_i32_0 : i32, i32
  }
  func.func @transform_4(%arg0: i32) -> (i32, i32) {
    %c0_i32 = arith.constant 0 : i32
    %c0_i32_0 = arith.constant 0 : i32
    %c0_i32_1 = arith.constant 0 : i32
    return %c0_i32, %c0_i32_0 : i32, i32
  }
  func.func @transform_5(%arg0: i32) -> (i32, i32) {
    %c0_i32 = arith.constant 0 : i32
    %c0_i32_0 = arith.constant 0 : i32
    %c0_i32_1 = arith.constant 0 : i32
    return %c0_i32, %c0_i32_0 : i32, i32
  }
  func.func @transform_6(%arg0: i32) -> (i32, i32) {
    %c0_i32 = arith.constant 0 : i32
    %c0_i32_0 = arith.constant 0 : i32
    %c0_i32_1 = arith.constant 0 : i32
    return %c0_i32, %c0_i32_0 : i32, i32
  }
  func.func @transform_7(%arg0: i32) -> (i32, i32) {
    %c0_i32 = arith.constant 0 : i32
    %c0_i32_0 = arith.constant 0 : i32
    %c0_i32_1 = arith.constant 0 : i32
    return %c0_i32, %c0_i32_0 : i32, i32
  }
  func.func @transform_8(%arg0: i32) -> (i32, i32) {
    %c0_i32 = arith.constant 0 : i32
    %c0_i32_0 = arith.constant 0 : i32
    %c0_i32_1 = arith.constant 0 : i32
    return %c0_i32, %c0_i32_0 : i32, i32
  }
  func.func @transform_9(%arg0: i32) -> (i32, i32, i32) {
    %c0_i32 = arith.constant 0 : i32
    %c0_i32_0 = arith.constant 0 : i32
    %c0_i32_1 = arith.constant 0 : i32
    return %arg0, %c0_i32, %c0_i32_0 : i32, i32, i32
  }
}

</mosaic_0001>

<bundles_post_ra>
// kernel: tpu_custom_call.1
= control target key start
LH: loop header
LB: loop body
LE: loop exit
PB: predicated region body
PF: predicated region fallthrough
CT: control target
= control target key end

     0   :  { %14 = vsyncpa [#allocation3], 0  ;;  %s1607_s0 = inlined_call_operand.hbm [shape: bf16[4,8,32], index: 0, kind: input, shape index: {}]   ;;  %s1608_s1 = inlined_call_operand.hbm [shape: bf16[4,8,32], index: 1, kind: input, shape index: {}]   ;;  %s1609_s2 = inlined_call_operand.hbm [shape: bf16[32,32], index: 2, kind: input, shape index: {}]   ;;  %s1610_s3 = inlined_call_operand.hbm [shape: bf16[32,32], index: 3, kind: input, shape index: {}]   ;;  %s1611_s4 = inlined_call_operand.hbm [shape: bf16[32,32], index: 4, kind: input, shape index: {}]   ;;  %s1612_s5 = inlined_call_operand.vmem [shape: f32[1,32], index: 5, kind: input, shape index: {}]   ;;  %s1613_s6 = inlined_call_operand.vmem [shape: f32[1,32], index: 6, kind: input, shape index: {}]   ;;  %s1614_s7 = inlined_call_operand.vmem [shape: f32[1,32], index: 7, kind: input, shape index: {}]   ;;  %s1615_s8 = inlined_call_operand.hbm [shape: f32[32,32], index: 8, kind: input, shape index: {}]   ;;  %s1616_s9 = inlined_call_operand.hbm [shape: f32[4,256], index: 9, kind: output, shape index: {}]  }
   0x1   :  { %15 = vsyncpa [#allocation6], 0 }
   0x2   :  { %16 = vsyncpa [#allocation9], 0 }
   0x3   :  { %17 = vsyncpa [#allocation12], 0 }
   0x4   :  { %18 = vsyncpa [#allocation4], 0  ;;  %s1349_s30 = smov [#allocation5]   ;;  %s1350_s11 = smov [#allocation8]  }
   0x5   :  { %s36_s10 = sshll.u32 %s1349_s30, 4  ;;  %s60_s12 = sshll.u32 %s1350_s11, 4  ;;  %s37_s10 = int_to_ptr.vmem [resolvable:$true] %s36_s10  ;;  %s1416_s12 = int_to_ptr.vmem [resolvable:$true] %s60_s12 }
   0x6   :  { %s1185_s15 = scalar_lea.hbm %s1608_s1, 256 }
   0x7   :  { %p1186_p0 = scmp.ne.s32.totalorder %s1608_s1, %s1185_s15  ;;  %p1189_p1 = scmp.lt.u32.totalorder %s1185_s15, %s1608_s1 }
   0x9   :  { %p1191_p2 = pnand %p1189_p1, %p1186_p0 }
   0xb   :  { %1194 = shalt.err (!%p1191_p2)
}
   0xc   :  { %s1195_s20 = scalar_lea.vmem %s37_s10, 256  ;;  %p1200_p4 = scmp.lt.s32.totalorder %s37_s10, %s37_s10 }
   0xd   :  { %p1196_p3 = scmp.ne.s32.totalorder %s37_s10, %s1195_s20  ;;  %p1201_p5 = scmp.lt.s32.totalorder %s1195_s20, %s1195_s20 }
   0xf   :  { %p1202_p6 = por %p1201_p5, %p1200_p4 }
  0x11   :  { %p1203_p7 = pnand %p1202_p6, %p1196_p3 }
  0x13   :  { %1206 = shalt.err (!%p1203_p7)
}
  0x14   :  { %s1351_s21 = smov 64   ;;  %s1352_s22 = smov 4  }
  0x15   :  { %42 = dma.hbm_to_vmem [thread:$0]  %s1608_s1, 256, %s37_s10, [#allocation6], %s1351_s21, %s1351_s21, %s1352_s22  }
  0x16   :  { %s1207_s27 = scalar_lea.hbm %s1610_s3, 256 }
  0x17   :  { %p1208_p8 = scmp.ne.s32.totalorder %s1610_s3, %s1207_s27  ;;  %p1211_p9 = scmp.lt.u32.totalorder %s1207_s27, %s1610_s3 }
  0x19   :  { %p1213_p10 = pnand %p1211_p9, %p1208_p8 }
  0x1b   :  { %1216 = shalt.err (!%p1213_p10)
}
  0x1c   :  { %s1217_s13 = scalar_lea.vmem %s1416_s12, 256  ;;  %p1222_p12 = scmp.lt.s32.totalorder %s1416_s12, %s1416_s12 }
  0x1d   :  { %p1218_p11 = scmp.ne.s32.totalorder %s1416_s12, %s1217_s13  ;;  %p1223_p13 = scmp.lt.s32.totalorder %s1217_s13, %s1217_s13 }
  0x1f   :  { %p1224_p0 = por %p1223_p13, %p1222_p12 }
  0x21   :  { %p1225_p1 = pnand %p1224_p0, %p1218_p11 }
  0x23   :  { %1228 = shalt.err (!%p1225_p1)
}
  0x24   :  { %66 = dma.hbm_to_vmem [thread:$0]  %s1610_s3, 256, %s1416_s12, [#allocation9], %s1351_s21, %s1351_s21, %s1352_s22  }
  0x25   :  { %s1353_s14 = smov [#allocation2]   ;;  %s1354_s16 = smov [#allocation7]  }
  0x26   :  { %s24_s15 = sshll.u32 %s1353_s14, 4  ;;  %s48_s17 = sshll.u32 %s1354_s16, 4  ;;  %s25_s15 = int_to_ptr.vmem [resolvable:$true] %s24_s15  ;;  %s1453_s17 = int_to_ptr.vmem [resolvable:$true] %s48_s17 }
  0x27   :  { %s1229_s20 = scalar_lea.hbm %s1607_s0, 256 }
  0x28   :  { %p1230_p2 = scmp.ne.s32.totalorder %s1607_s0, %s1229_s20  ;;  %p1233_p3 = scmp.lt.u32.totalorder %s1229_s20, %s1607_s0 }
  0x2a   :  { %p1235_p4 = pnand %p1233_p3, %p1230_p2 }
  0x2c   :  { %1238 = shalt.err (!%p1235_p4)
}
  0x2d   :  { %s1239_s3 = scalar_lea.vmem %s25_s15, 256  ;;  %p1244_p6 = scmp.lt.s32.totalorder %s25_s15, %s25_s15 }
  0x2e   :  { %p1240_p5 = scmp.ne.s32.totalorder %s25_s15, %s1239_s3  ;;  %p1245_p7 = scmp.lt.s32.totalorder %s1239_s3, %s1239_s3 }
  0x30   :  { %p1246_p8 = por %p1245_p7, %p1244_p6 }
  0x32   :  { %p1247_p9 = pnand %p1246_p8, %p1240_p5 }
  0x34   :  { %1250 = shalt.err (!%p1247_p9)
}
  0x35   :  { %30 = dma.hbm_to_vmem [thread:$0]  %s1607_s0, 256, %s25_s15, [#allocation3], %s1351_s21, %s1351_s21, %s1352_s22  }
  0x36   :  { %s1251_s30 = scalar_lea.hbm %s1609_s2, 256 }
  0x37   :  { %p1252_p10 = scmp.ne.s32.totalorder %s1609_s2, %s1251_s30  ;;  %p1255_p11 = scmp.lt.u32.totalorder %s1251_s30, %s1609_s2 }
  0x39   :  { %p1257_p12 = pnand %p1255_p11, %p1252_p10 }
  0x3b   :  { %1260 = shalt.err (!%p1257_p12)
}
  0x3c   :  { %s1261_s14 = scalar_lea.vmem %s1453_s17, 256  ;;  %p1266_p0 = scmp.lt.s32.totalorder %s1453_s17, %s1453_s17 }
  0x3d   :  { %p1262_p13 = scmp.ne.s32.totalorder %s1453_s17, %s1261_s14  ;;  %p1267_p1 = scmp.lt.s32.totalorder %s1261_s14, %s1261_s14 }
  0x3f   :  { %p1268_p2 = por %p1267_p1, %p1266_p0 }
  0x41   :  { %p1269_p3 = pnand %p1268_p2, %p1262_p13 }
  0x43   :  { %1272 = shalt.err (!%p1269_p3)
}
  0x44   :  { %54 = dma.hbm_to_vmem [thread:$0]  %s1609_s2, 256, %s1453_s17, [#allocation6], %s1351_s21, %s1351_s21, %s1352_s22  }
  0x45   :  { %s1355_s16 = smov [#allocation10]   ;;  %s1356_s19 = smov [#allocation11]  }
  0x46   :  { %s72_s18 = sshll.u32 %s1355_s16, 4  ;;  %s90_s20 = sshll.u32 %s1356_s19, 4  ;;  %s73_s18 = int_to_ptr.vmem [resolvable:$true] %s72_s18  ;;  %s1490_s20 = int_to_ptr.vmem [resolvable:$true] %s90_s20 }
  0x47   :  { %s1273_s25 = scalar_lea.hbm %s1611_s4, 256 }
  0x48   :  { %p1274_p4 = scmp.ne.s32.totalorder %s1611_s4, %s1273_s25  ;;  %p1277_p5 = scmp.lt.u32.totalorder %s1273_s25, %s1611_s4 }
  0x4a   :  { %p1279_p6 = pnand %p1277_p5, %p1274_p4 }
  0x4c   :  { %1282 = shalt.err (!%p1279_p6)
}
  0x4d   :  { %s1283_s2 = scalar_lea.vmem %s73_s18, 256  ;;  %p1288_p8 = scmp.lt.s32.totalorder %s73_s18, %s73_s18 }
  0x4e   :  { %p1284_p7 = scmp.ne.s32.totalorder %s73_s18, %s1283_s2  ;;  %p1289_p9 = scmp.lt.s32.totalorder %s1283_s2, %s1283_s2 }
  0x50   :  { %p1290_p10 = por %p1289_p9, %p1288_p8 }
  0x52   :  { %p1291_p11 = pnand %p1290_p10, %p1284_p7 }
  0x54   :  { %1294 = shalt.err (!%p1291_p11)
}
  0x55   :  { %78 = dma.hbm_to_vmem [thread:$0]  %s1611_s4, 256, %s73_s18, [#allocation9], %s1351_s21, %s1351_s21, %s1352_s22  }
  0x56   :  { %s1295_s11 = scalar_lea.hbm %s1615_s8, 512 }
  0x57   :  { %p1296_p12 = scmp.ne.s32.totalorder %s1615_s8, %s1295_s11  ;;  %p1299_p13 = scmp.lt.u32.totalorder %s1295_s11, %s1615_s8 }
  0x59   :  { %p1301_p0 = pnand %p1299_p13, %p1296_p12 }
  0x5b   :  { %1304 = shalt.err (!%p1301_p0)
}
  0x5c   :  { %s1305_s0 = scalar_lea.vmem %s1490_s20, 512  ;;  %p1310_p2 = scmp.lt.s32.totalorder %s1490_s20, %s1490_s20 }
  0x5d   :  { %p1306_p1 = scmp.ne.s32.totalorder %s1490_s20, %s1305_s0  ;;  %p1311_p3 = scmp.lt.s32.totalorder %s1305_s0, %s1305_s0 }
  0x5f   :  { %p1312_p4 = por %p1311_p3, %p1310_p2 }
  0x61   :  { %p1313_p5 = pnand %p1312_p4, %p1306_p1 }
  0x63   :  { %1316 = shalt.err (!%p1313_p5)
}
  0x64   :  { %s1357_s4 = smov 128   ;;  %s1358_s22 = smov 8  }
  0x65   :  { %96 = dma.hbm_to_vmem [thread:$0]  %s1615_s8, 512, %s1490_s20, [#allocation12], %s1357_s4, %s1357_s4, %s1358_s22  }
  0x66   :  { %1339 = dma.done.wait [#allocation3], 256  }
  0x67   :  { %1340 = vsyncadd [#allocation3], 4294967040 }
  0x68   :  { %1341 = dma.done.wait [#allocation6], 512  }
  0x69   :  { %1342 = vsyncadd [#allocation6], 4294966784 }
  0x6a   :  { %1343 = dma.done.wait [#allocation9], 512  }
  0x6b   :  { %1344 = vsyncadd [#allocation9], 4294966784 }
  0x6c   :  { %1345 = dma.done.wait [#allocation12], 512  }
  0x6d   :  { %1346 = vsyncadd [#allocation12], 4294966784  ;;  %v1175_v0 = vld [vmem:[#allocation8] sm:$0xff]   ;;  %v1176_v1 = vld [vmem:[#allocation8 + $0x8] sm:$0xff]   ;;  %vm157_vm0 = vcmask 261120   ;;  %vm404_vm1 = vcmask 1043456  }
  0x6e   :  { %1081 = vmatprep.subr.bf16.mxu1 %v1175_v0  ;;  %v1177_v2 = vld [vmem:[#allocation5] sm:$0xff]   ;;  %v1178_v3 = vld [vmem:[#allocation5 + $0x8] sm:$0xff]   ;;  %v1179_v4 = vld [vmem:[#allocation7] sm:$0xff]   ;;  %vm397_vm2 = vcmask 64512   ;;  %v1359_v52 = vmov 0.0   ;;  %vm1360_vm3 = vmmov 0  }
  0x6f   :  { %1082 = vmatpush3.bf16.msra.mxu1 %v1175_v0  ;;  %1085 = vmatprep.mubr.msk.bf16.mxu1 %vm157_vm0, %v1177_v2  ;;  %v1180_v5 = vld [vmem:[#allocation7 + $0x8] sm:$0xff]   ;;  %v1181_v6 = vld [vmem:[#allocation2] sm:$0xff]   ;;  %v679_v57 = vld [vmem:[#allocation11] sm:$0xff]  ;;  %s1364_s23 = smov 96   ;;  %vm976_vm4 = vcmask 523264   ;;  %vm978_vm5 = vcmask 785408  }
  0x70   :  { %1083 = vmatprep.subr.bf16.mxu1 %v1176_v1  ;;  %1073 = vmatprep.subr.bf16.mxu0 %v1179_v4  ;;  %v1183_v7 = vld [vmem:[#allocation10] sm:$0xff]   ;;  %v1182_v8 = vld [vmem:[#allocation2 + $0x8] sm:$0xff]   ;;  %v680_v58 = vld [vmem:[#allocation11 + $0x8] sm:$0xff] }
  0x71   :  { %1074 = vmatpush3.bf16.msra.mxu0 %v1179_v4  ;;  %1077 = vmatprep.mubr.msk.bf16.mxu0 %vm157_vm0, %v1181_v6  ;;  %v1184_v9 = vld [vmem:[#allocation10 + $0x8] sm:$0xff]   ;;  %v1013_v10 = vld [vmem:[%s1613_s6] ss:$0 sm:$0xff] }
  0x72   :  { %1075 = vmatprep.subr.bf16.mxu0 %v1180_v5  ;;  %v1020_v27 = vld [vmem:[%s1614_s7] ss:$0 sm:$0xff]  ;;  %v682_v55 = vld [vmem:[#allocation11 + $0x18] sm:$0xff] }
  0x73   :  { %1084 = vmatpush3.bf16.msra.mxu1 %v1176_v1  ;;  %v681_v54 = vld [vmem:[#allocation11 + $0x10] sm:$0xff] }
  0x75   :  { %1076 = vmatpush3.bf16.msra.mxu0 %v1180_v5 }
  0x76   :  { %1086 = vmatmul.mubr.msk.bf16.vlgmr.msra.gmra.mrb[0].mxu1 %vm157_vm0, %v1178_v3  ;;  %1089 = vmatprep.subr.bf16.mxu0 %v1183_v7 }
  0x78   :  { %1078 = vmatmul.mubr.msk.bf16.vlgmr.msra.gmra.mrb[0].mxu0 %vm157_vm0, %v1182_v8 }
  0x79   :  { %1090 = vmatpush3.bf16.msra.mxu0 %v1183_v7  ;;  %1093 = vmatprep.mubr.msk.bf16.mxu0 %vm157_vm0, %v1177_v2  ;;  %v1006_v2 = vld [vmem:[%s1612_s5] ss:$0 sm:$0xff]  ;;  %s1363_s5 = smov 32  }
  0x7a   :  { %1091 = vmatprep.subr.bf16.mxu0 %v1184_v9 }
  0x7d   :  { %1092 = vmatpush3.bf16.msra.mxu0 %v1184_v9 }
  0x80   :  { %1094 = vmatmul.mubr.msk.bf16.vlgmr.msra.gmra.mrb[4].mxu0 %vm157_vm0, %v1178_v3 }
 0x149   :  { %v1087_v11 = vpop.f32.mrb[0].mxu1 }
 0x14a   :  { %v286_v12 = vpop.f32.mrb[1].mxu1  ;;  %v295_v13 = vadd.f32 %v1087_v11, %v1013_v10 }
 0x14b   :  { %v1088_v14 = vpop.f32.mrb[2].mxu1  ;;  %v287_v15 = vadd.f32 %v1013_v10, %v286_v12  ;;  %v1533_v20 = vpop.f32.mrb[0].mxu0 }
 0x14c   :  { %v289_v16 = vpop.f32.mrb[3].mxu1  ;;  %v375_v17 = vpack.c.bf16 %v295_v13, %v295_v13  ;;  %v298_v18 = vadd.f32 %v1088_v14, %v1013_v10  ;;  %v1535_v22 = vpop.f32.mrb[1].mxu0 }
 0x14d   :  { %v373_v19 = vpack.c.bf16 %v287_v15, %v287_v15  ;;  %v290_v21 = vadd.f32 %v1013_v10, %v289_v16  ;;  %v1537_v23 = vpop.f32.mrb[2].mxu0  ;;  %v199_v6 = vadd.f32 %v1006_v2, %v1535_v22 }
 0x14e   :  { %531 = vxpose.xlu1.c.b16.start.end [1/1] (short) (narrow) %v375_v17, 32  ;;  %v1539_v24 = vpop.f32.mrb[3].mxu0  ;;  %v376_v25 = vpack.c.bf16 %v298_v18, %v298_v18 }
 0x14f   :  { %381 = vxpose.xlu0.c.b16.start.end [1/1] (short) (narrow) %v373_v19, 32  ;;  %v374_v26 = vpack.c.bf16 %v290_v21, %v290_v21 }
 0x153   :  { %605 = vxpose.xlu1.c.b16.start.end [1/1] (short) (narrow) %v376_v25, 32  ;;  %v1095_v28 = vpop.f32.mrb[4].mxu0  ;;  %v699_v25 = vpack.c.bf16 %v199_v6, %v199_v6 }
 0x154   :  { %457 = vxpose.xlu0.c.b16.start.end [1/1] (short) (narrow) %v374_v26, 32  ;;  %v367_v29 = vadd.f32 %v1095_v28, %v1020_v27  ;;  %v358_v30 = vpop.f32.mrb[5].mxu0 }
 0x155   :  { %v359_v31 = vadd.f32 %v1020_v27, %v358_v30  ;;  %v1096_v32 = vpop.f32.mrb[6].mxu0  ;;  %v207_v30 = vadd.f32 %v1533_v20, %v1006_v2 }
 0x156   :  { %v379_v33 = vpack.c.bf16 %v367_v29, %v367_v29  ;;  %v370_v34 = vadd.f32 %v1096_v32, %v1020_v27  ;;  %v361_v35 = vpop.f32.mrb[7].mxu0 }
 0x157   :  { %v377_v36 = vpack.c.bf16 %v359_v31, %v359_v31  ;;  %v362_v37 = vadd.f32 %v1020_v27, %v361_v35  ;;  %v202_v31 = vadd.f32 %v1006_v2, %v1539_v24 }
 0x158   :  { %v554_v38 = vsel %vm404_vm1, %v379_v33, 0  ;;  %v380_v39 = vpack.c.bf16 %v370_v34, %v370_v34 }
 0x159   :  { %v406_v40 = vsel %vm404_vm1, %v377_v36, 0  ;;  %v378_v41 = vpack.c.bf16 %v362_v37, %v362_v37  ;;  %1153 = vmatprep.subr.msk.bf16.mxu1 %vm404_vm1, %v377_v36  ;;  %v700_v20 = vpack.c.bf16 %v202_v31, %v202_v31 }
 0x15a   :  { %v628_v42 = vsel %vm404_vm1, %v380_v39, 0  ;;  %1098 = vmatpush3.bf16.msra.mxu1 %v406_v40 }
 0x15b   :  { %v480_v43 = vsel %vm404_vm1, %v378_v41, 0  ;;  %1154 = vmatprep.subr.msk.bf16.mxu0 %vm404_vm1, %v378_v41  ;;  %1155 = vmatprep.subr.msk.bf16.mxu1 %vm404_vm1, %v379_v33  ;;  %v210_v41 = vadd.f32 %v1537_v23, %v1006_v2 }
 0x15c   :  { %1104 = vmatpush3.bf16.msra.mxu0 %v480_v43 }
 0x15d   :  { %1156 = vmatprep.subr.msk.bf16.mxu0 %vm404_vm1, %v380_v39  ;;  %v701_v39 = vpack.c.bf16 %v207_v30, %v207_v30 }
 0x1b4   :  { %v539_v44 = vpop.trf.xlu1 }
 0x1b5   :  { %v389_v45 = vpop.trf.xlu0 }
 0x1b6   :  { %1099 = vmatprep.mubr.msk.bf16.mxu1 %vm397_vm2, %v389_v45 }
 0x1b8   :  { %v540_v47 = vpop.trf.xlu1 }
 0x1b9   :  { %v390_v46 = vpop.trf.xlu0 }
 0x1ba   :  { %1100 = vmatmul.mubr.msk.bf16.vlgmr.msra.gmra.mrb[4].mxu1 %vm397_vm2, %v390_v46 }
 0x1bb   :  { %1110 = vmatpush3.bf16.msra.mxu1 %v554_v38  ;;  %1111 = vmatprep.mubr.msk.bf16.mxu1 %vm397_vm2, %v539_v44 }
 0x1bc   :  { %v613_v49 = vpop.trf.xlu1  ;;  %1121 = vmatprep.subr.bf16.mxu1 %v1359_v52 }
 0x1bd   :  { %v465_v48 = vpop.trf.xlu0 }
 0x1be   :  { %1105 = vmatprep.mubr.msk.bf16.mxu0 %vm397_vm2, %v465_v48 }
 0x1c0   :  { %v614_v51 = vpop.trf.xlu1 }
 0x1c1   :  { %v466_v50 = vpop.trf.xlu0 }
 0x1c2   :  { %1106 = vmatmul.mubr.msk.bf16.vlgmr.msra.gmra.mrb[8].mxu0 %vm397_vm2, %v466_v50  ;;  %1112 = vmatmul.mubr.msk.bf16.vlgmr.msra.gmra.mrb[8].mxu1 %vm397_vm2, %v540_v47  ;;  %v1361_v47 = vmov 1983009808  }
 0x1c3   :  { %1116 = vmatpush3.bf16.msra.mxu0 %v628_v42  ;;  %1117 = vmatprep.mubr.msk.bf16.mxu0 %vm397_vm2, %v613_v49  ;;  %v702_v42 = vpack.c.bf16 %v210_v41, %v210_v41  ;;  %v886_v48 = vunpack.c.l.s4 %v1361_v47  ;;  %v888_v49 = vlaneseq }
 0x1c4   :  { %1129 = vmatprep.subr.bf16.mxu0 %v1359_v52  ;;  %1125 = vmatprep.mubr.msk.bf16.mxu1 %vm1360_vm3, %v1359_v52 }
 0x1ca   :  { %1118 = vmatmul.mubr.msk.bf16.vlgmr.msra.gmra.mrb[12].mxu0 %vm397_vm2, %v614_v51 }
 0x1cb   :  { %1133 = vmatprep.mubr.msk.bf16.mxu0 %vm1360_vm3, %v1359_v52 }
 0x28d   :  { %v1101_v53 = vpop.f32.mrb[4].mxu1 }
 0x28e   :  { %v442_v56 = vpop.f32.mrb[5].mxu1  ;;  %v685_v60 = vmul.f32 %v1101_v53, %v681_v54 }
 0x28f   :  { %v1102_v59 = vpop.f32.mrb[6].mxu1  ;;  %v683_v63 = vmul.f32 %v679_v57, %v442_v56 }
 0x290   :  { %v686_v61 = vmul.f32 %v1102_v59, %v682_v55  ;;  %v445_v62 = vpop.f32.mrb[7].mxu1 }
 0x291   :  { %v684_v0 = vmul.f32 %v680_v58, %v445_v62 }
 0x292   :  { %v704_v1 = vpack.c.bf16 %v686_v61, %v685_v60  ;;  %v887_v60 = vunpack.c.0.s8 %v886_v48  ;;  %v889_v61 = vshrl.u32 %v888_v49, 7 }
 0x293   :  { %v703_v3 = vpack.c.bf16 %v684_v0, %v683_v63 }
 0x295   :  { %v1107_v4 = vpop.f32.mrb[8].mxu0  ;;  %v1113_v5 = vpop.f32.mrb[8].mxu1  ;;  %1122 = vmatpush3.bf16.msra.mxu1 %v703_v3 }
 0x296   :  { %v516_v7 = vpop.f32.mrb[9].mxu0  ;;  %v590_v8 = vpop.f32.mrb[9].mxu1  ;;  %1123 = vmatprep.subr.bf16.mxu1 %v1359_v52  ;;  %v689_v11 = vmul.f32 %v1107_v4, %v681_v54  ;;  %v693_v12 = vmul.f32 %v1113_v5, %v681_v54 }
 0x297   :  { %v1108_v9 = vpop.f32.mrb[10].mxu0  ;;  %v1114_v10 = vpop.f32.mrb[10].mxu1  ;;  %v687_v17 = vmul.f32 %v679_v57, %v516_v7  ;;  %v691_v18 = vmul.f32 %v679_v57, %v590_v8 }
 0x298   :  { %v690_v13 = vmul.f32 %v1108_v9, %v682_v55  ;;  %v694_v14 = vmul.f32 %v1114_v10, %v682_v55  ;;  %v519_v15 = vpop.f32.mrb[11].mxu0  ;;  %v593_v16 = vpop.f32.mrb[11].mxu1 }
 0x299   :  { %v688_v19 = vmul.f32 %v680_v58, %v519_v15  ;;  %v692_v21 = vmul.f32 %v680_v58, %v593_v16  ;;  %1124 = vmatpush3.bf16.msra.mxu1 %v704_v1  ;;  %v890_v1 = vsub.s32 %v887_v60, %v889_v61 }
 0x29a   :  { %v706_v26 = vpack.c.bf16 %v690_v13, %v689_v11  ;;  %v708_v22 = vpack.c.bf16 %v694_v14, %v693_v12  ;;  %1137 = vmatprep.subr.bf16.mxu1 %v1359_v52 }
 0x29b   :  { %v705_v27 = vpack.c.bf16 %v688_v19, %v687_v17  ;;  %v707_v28 = vpack.c.bf16 %v692_v21, %v691_v18 }
 0x29c   :  { %1126 = vmatmul.mubr.msk.bf16.vlgmr.msra.gmra.mrb[12].mxu1 %vm157_vm0, %v699_v25 }
 0x29d   :  { %v1119_v29 = vpop.f32.mrb[12].mxu0  ;;  %1130 = vmatpush3.bf16.msra.mxu0 %v705_v27  ;;  %1138 = vmatpush3.bf16.msra.mxu1 %v707_v28 }
 0x29e   :  { %v664_v32 = vpop.f32.mrb[13].mxu0  ;;  %1131 = vmatprep.subr.bf16.mxu0 %v1359_v52  ;;  %1139 = vmatprep.subr.bf16.mxu1 %v1359_v52  ;;  %v697_v34 = vmul.f32 %v1119_v29, %v681_v54 }
 0x29f   :  { %v1120_v33 = vpop.f32.mrb[14].mxu0  ;;  %1141 = vmatprep.mubr.msk.bf16.mxu1 %vm1360_vm3, %v1359_v52  ;;  %v695_v37 = vmul.f32 %v679_v57, %v664_v32 }
 0x2a0   :  { %v698_v35 = vmul.f32 %v1120_v33, %v682_v55  ;;  %v667_v36 = vpop.f32.mrb[15].mxu0 }
 0x2a1   :  { %v696_v38 = vmul.f32 %v680_v58, %v667_v36  ;;  %1132 = vmatpush3.bf16.msra.mxu0 %v706_v26  ;;  %1140 = vmatpush3.bf16.msra.mxu1 %v708_v22  ;;  %v1362_v58 = vmov 1934713408  }
 0x2a2   :  { %v710_v40 = vpack.c.bf16 %v698_v35, %v697_v34  ;;  %1145 = vmatprep.subr.bf16.mxu0 %v1359_v52  ;;  %v918_v59 = vunpack.c.l.s4 %v1362_v58 }
 0x2a3   :  { %v709_v24 = vpack.c.bf16 %v696_v38, %v695_v37 }
 0x2a4   :  { %1134 = vmatmul.mubr.msk.bf16.vlgmr.msra.gmra.mrb[16].mxu0 %vm157_vm0, %v700_v20  ;;  %1142 = vmatmul.mubr.msk.bf16.vlgmr.msra.gmra.mrb[16].mxu1 %vm157_vm0, %v701_v39  ;;  %v919_v0 = vunpack.c.0.s8 %v918_v59 }
 0x2a5   :  { %1146 = vmatpush3.bf16.msra.mxu0 %v709_v24  ;;  %1149 = vmatprep.mubr.msk.bf16.mxu0 %vm1360_vm3, %v1359_v52 }
 0x2a6   :  { %1147 = vmatprep.subr.bf16.mxu0 %v1359_v52  ;;  %v922_v7 = vsub.s32 %v919_v0, %v889_v61 }
 0x2a9   :  { %1148 = vmatpush3.bf16.msra.mxu0 %v710_v40 }
 0x2ac   :  { %1150 = vmatmul.mubr.msk.bf16.vlgmr.msra.gmra.mrb[20].mxu0 %vm157_vm0, %v702_v42 }
 0x36f   :  { %v748_v43 = vpop.f32.mrb[12].mxu1 }
 0x370   :  { %v1127_v44 = vpop.f32.mrb[13].mxu1 }
 0x371   :  { %v751_v45 = vpop.f32.mrb[14].mxu1 }
 0x372   :  { %v1128_v46 = vpop.f32.mrb[15].mxu1 }
 0x377   :  { %v791_v50 = vpop.f32.mrb[16].mxu0  ;;  %v834_v51 = vpop.f32.mrb[16].mxu1 }
 0x378   :  { %v883_v53 = vcombine.low %v748_v43, %v834_v51  ;;  %v884_v54 = vcombine.high %v748_v43, %v834_v51  ;;  %v1135_v55 = vpop.f32.mrb[17].mxu0  ;;  %v1143_v56 = vpop.f32.mrb[17].mxu1 }
 0x379   :  { %v794_v23 = vpop.f32.mrb[18].mxu0  ;;  %v837_v57 = vpop.f32.mrb[18].mxu1 }
 0x37a   :  { %v1136_v62 = vpop.f32.mrb[19].mxu0  ;;  %v1144_v63 = vpop.f32.mrb[19].mxu1  ;;  %v891_v8 = vrot.slane %v883_v53, %v890_v1  ;;  %v898_v9 = vrot.slane %v884_v54, %v890_v1 }
 0x37f   :  { %v877_v2 = vpop.f32.mrb[20].mxu0 }
 0x380   :  { %v899_v3 = vcombine.low %v791_v50, %v877_v2  ;;  %v900_v4 = vcombine.high %v791_v50, %v877_v2  ;;  %v1151_v5 = vpop.f32.mrb[21].mxu0 }
 0x381   :  { %v880_v6 = vpop.f32.mrb[22].mxu0 }
 0x382   :  { %v907_v10 = vrot.slane %v899_v3, %v890_v1  ;;  %v914_v11 = vrot.slane %v900_v4, %v890_v1  ;;  %v1152_v12 = vpop.f32.mrb[23].mxu0 }
 0x384   :  { %v915_v13 = vcombine.low %v891_v8, %v907_v10  ;;  %v931_v14 = vcombine.low %v898_v9, %v914_v11  ;;  %v916_v15 = vcombine.high %v891_v8, %v907_v10  ;;  %v932_v16 = vcombine.high %v898_v9, %v914_v11 }
 0x386   :  { %v930_v17 = vrot.slane %v916_v15, %v922_v7  ;;  %v923_v18 = vrot.slane %v915_v13, %v922_v7  ;;  %v946_v21 = vrot.slane %v932_v16, %v922_v7  ;;  %v939_v25 = vrot.slane %v931_v14, %v922_v7 }
 0x388   :  { %956 = vrot.lane.b32.xlu1 %v930_v17, %s1351_s21  ;;  %v947_v19 = vcombine.high %v923_v18, %v1359_v52  ;;  %v948_v26 = vcombine.high %v930_v17, %v1359_v52  ;;  %v949_v22 = vcombine.high %v939_v25, %v1359_v52  ;;  %v950_v27 = vcombine.high %v946_v21, %v1359_v52 }
 0x38a   :  { %952 = vrot.lane.b32.xlu0 %v947_v19, %s1363_s5 }
 0x38c   :  { %968 = vrot.lane.b32.xlu1 %v946_v21, %s1351_s21  ;;  %s1365_s21 = smov [#allocation13]  }
 0x38d   :  { %s994_s24 = sshll.u32 %s1365_s21, 4  ;;  %s995_s24 = int_to_ptr.vmem [resolvable:$true] %s994_s24 }
 0x38e   :  { %960 = vrot.lane.b32.xlu0 %v948_v26, %s1364_s23  ;;  %s1317_s25 = scalar_lea.vmem %s995_s24, 128  ;;  %p1322_p7 = scmp.lt.s32.totalorder %s995_s24, %s995_s24 }
 0x38f   :  { %p1318_p6 = scmp.ne.s32.totalorder %s995_s24, %s1317_s25  ;;  %p1323_p8 = scmp.lt.s32.totalorder %s1317_s25, %s1317_s25 }
 0x390   :  { %964 = vrot.lane.b32.xlu1 %v949_v22, %s1363_s5 }
 0x391   :  { %p1324_p9 = por %p1323_p8, %p1322_p7 }
 0x393   :  { %p1325_p10 = pnand %p1324_p9, %p1318_p6 }
 0x394   :  { %972 = vrot.lane.b32.xlu1 %v950_v27, %s1364_s23 }
 0x3fa   :  { %v957_v28 = vpop.permute.xlu1 %956 }
 0x3fc   :  { %v953_v29 = vpop.permute.xlu0 %952 }
 0x3fd   :  { %v975_v32 = vsel %vm157_vm0, %v923_v18, %v953_v29 }
 0x3fe   :  { %v969_v30 = vpop.permute.xlu1 %968  ;;  %v977_v35 = vsel %vm976_vm4, %v975_v32, %v957_v28 }
 0x400   :  { %v961_v34 = vpop.permute.xlu0 %960 }
 0x401   :  { %v979_v38 = vsel %vm978_vm5, %v977_v35, %v961_v34 }
 0x402   :  { %v965_v31 = vpop.permute.xlu1 %964 }
 0x403   :  { %v980_v33 = vsel %vm157_vm0, %v939_v25, %v965_v31 }
 0x404   :  { %v981_v36 = vsel %vm976_vm4, %v980_v33, %v969_v30 }
 0x406   :  { %v973_v37 = vpop.permute.xlu1 %972 }
 0x407   :  { %v982_v39 = vsel %vm978_vm5, %v981_v36, %v973_v37 }
 0x408   :  { %v985_v52 = vcombine.low %v979_v38, %v982_v39 }
 0x40a   :  { %987 = vst [vmem:[#allocation13] sm:$0xff] %v985_v52 }
 0x40b   :  { %1328 = shalt.err (!%p1325_p10)
}
 0x40c   :  { %s1329_s12 = scalar_lea.hbm %s1616_s9, 128 }
 0x40d   :  { %p1330_p11 = scmp.ne.s32.totalorder %s1616_s9, %s1329_s12  ;;  %p1333_p12 = scmp.lt.u32.totalorder %s1329_s12, %s1616_s9 }
 0x40f   :  { %p1335_p13 = pnand %p1333_p12, %p1330_p11 }
 0x411   :  { %1338 = shalt.err (!%p1335_p13)
}
 0x412   :  { %997 = dma.vmem_to_hbm [thread:$0]  %s995_s24, 128, %s1616_s9, [#allocation4]  }
 0x413   :  { %1347 = dma.done.wait [#allocation4], 128  }
 0x414   :  { %1348 = vsyncadd [#allocation4], 4294967168 }
 0x415   :  { %1001 = vsyncpa [#allocation3], 1 }
 0x416   :  { %1002 = vsyncpa [#allocation6], 1 }
 0x417   :  { %1003 = vsyncpa [#allocation9], 1 }
 0x418   :  { %1004 = vsyncpa [#allocation12], 1 }
 0x419   :  { %1005 = vsyncpa [#allocation4], 1 }

// kernel: tpu_custom_call.1
= control target key start
LH: loop header
LB: loop body
LE: loop exit
PB: predicated region body
PF: predicated region fallthrough
CT: control target
= control target key end

     0   :  { %14 = vsyncpa [#allocation3], 0  ;;  %s1502_s0 = inlined_call_operand.hbm [shape: bf16[4,8,32], index: 0, kind: input, shape index: {}]   ;;  %s1503_s1 = inlined_call_operand.hbm [shape: bf16[4,8,32], index: 1, kind: input, shape index: {}]   ;;  %s1504_s2 = inlined_call_operand.hbm [shape: bf16[32,32], index: 2, kind: input, shape index: {}]   ;;  %s1505_s3 = inlined_call_operand.hbm [shape: bf16[32,32], index: 3, kind: input, shape index: {}]   ;;  %s1506_s4 = inlined_call_operand.hbm [shape: bf16[32,32], index: 4, kind: input, shape index: {}]   ;;  %s1507_s5 = inlined_call_operand.vmem [shape: f32[1,32], index: 5, kind: input, shape index: {}]   ;;  %s1508_s6 = inlined_call_operand.vmem [shape: f32[1,32], index: 6, kind: input, shape index: {}]   ;;  %s1509_s7 = inlined_call_operand.vmem [shape: f32[1,32], index: 7, kind: input, shape index: {}]   ;;  %s1510_s8 = inlined_call_operand.hbm [shape: f32[32,32], index: 8, kind: input, shape index: {}]   ;;  %s1511_s9 = inlined_call_operand.hbm [shape: f32[4,8,32], index: 9, kind: output, shape index: {}]  }
   0x1   :  { %15 = vsyncpa [#allocation6], 0 }
   0x2   :  { %16 = vsyncpa [#allocation9], 0 }
   0x3   :  { %17 = vsyncpa [#allocation12], 0 }
   0x4   :  { %18 = vsyncpa [#allocation4], 0  ;;  %s1246_s30 = smov [#allocation5]   ;;  %s1247_s11 = smov [#allocation8]  }
   0x5   :  { %s36_s10 = sshll.u32 %s1246_s30, 4  ;;  %s60_s12 = sshll.u32 %s1247_s11, 4  ;;  %s37_s10 = int_to_ptr.vmem [resolvable:$true] %s36_s10  ;;  %s1309_s12 = int_to_ptr.vmem [resolvable:$true] %s60_s12 }
   0x6   :  { %s1082_s15 = scalar_lea.hbm %s1503_s1, 256 }
   0x7   :  { %p1083_p0 = scmp.ne.s32.totalorder %s1503_s1, %s1082_s15  ;;  %p1086_p1 = scmp.lt.u32.totalorder %s1082_s15, %s1503_s1 }
   0x9   :  { %p1088_p2 = pnand %p1086_p1, %p1083_p0 }
   0xb   :  { %1091 = shalt.err (!%p1088_p2)
}
   0xc   :  { %s1092_s20 = scalar_lea.vmem %s37_s10, 256  ;;  %p1097_p4 = scmp.lt.s32.totalorder %s37_s10, %s37_s10 }
   0xd   :  { %p1093_p3 = scmp.ne.s32.totalorder %s37_s10, %s1092_s20  ;;  %p1098_p5 = scmp.lt.s32.totalorder %s1092_s20, %s1092_s20 }
   0xf   :  { %p1099_p6 = por %p1098_p5, %p1097_p4 }
  0x11   :  { %p1100_p7 = pnand %p1099_p6, %p1093_p3 }
  0x13   :  { %1103 = shalt.err (!%p1100_p7)
}
  0x14   :  { %s1248_s21 = smov 64   ;;  %s1249_s22 = smov 4  }
  0x15   :  { %42 = dma.hbm_to_vmem [thread:$0]  %s1503_s1, 256, %s37_s10, [#allocation6], %s1248_s21, %s1248_s21, %s1249_s22  }
  0x16   :  { %s1104_s27 = scalar_lea.hbm %s1505_s3, 256 }
  0x17   :  { %p1105_p8 = scmp.ne.s32.totalorder %s1505_s3, %s1104_s27  ;;  %p1108_p9 = scmp.lt.u32.totalorder %s1104_s27, %s1505_s3 }
  0x19   :  { %p1110_p10 = pnand %p1108_p9, %p1105_p8 }
  0x1b   :  { %1113 = shalt.err (!%p1110_p10)
}
  0x1c   :  { %s1114_s13 = scalar_lea.vmem %s1309_s12, 256  ;;  %p1119_p12 = scmp.lt.s32.totalorder %s1309_s12, %s1309_s12 }
  0x1d   :  { %p1115_p11 = scmp.ne.s32.totalorder %s1309_s12, %s1114_s13  ;;  %p1120_p13 = scmp.lt.s32.totalorder %s1114_s13, %s1114_s13 }
  0x1f   :  { %p1121_p0 = por %p1120_p13, %p1119_p12 }
  0x21   :  { %p1122_p1 = pnand %p1121_p0, %p1115_p11 }
  0x23   :  { %1125 = shalt.err (!%p1122_p1)
}
  0x24   :  { %66 = dma.hbm_to_vmem [thread:$0]  %s1505_s3, 256, %s1309_s12, [#allocation9], %s1248_s21, %s1248_s21, %s1249_s22  }
  0x25   :  { %s1250_s14 = smov [#allocation2]   ;;  %s1251_s16 = smov [#allocation7]  }
  0x26   :  { %s24_s15 = sshll.u32 %s1250_s14, 4  ;;  %s48_s17 = sshll.u32 %s1251_s16, 4  ;;  %s25_s15 = int_to_ptr.vmem [resolvable:$true] %s24_s15  ;;  %s1346_s17 = int_to_ptr.vmem [resolvable:$true] %s48_s17 }
  0x27   :  { %s1126_s20 = scalar_lea.hbm %s1502_s0, 256 }
  0x28   :  { %p1127_p2 = scmp.ne.s32.totalorder %s1502_s0, %s1126_s20  ;;  %p1130_p3 = scmp.lt.u32.totalorder %s1126_s20, %s1502_s0 }
  0x2a   :  { %p1132_p4 = pnand %p1130_p3, %p1127_p2 }
  0x2c   :  { %1135 = shalt.err (!%p1132_p4)
}
  0x2d   :  { %s1136_s3 = scalar_lea.vmem %s25_s15, 256  ;;  %p1141_p6 = scmp.lt.s32.totalorder %s25_s15, %s25_s15 }
  0x2e   :  { %p1137_p5 = scmp.ne.s32.totalorder %s25_s15, %s1136_s3  ;;  %p1142_p7 = scmp.lt.s32.totalorder %s1136_s3, %s1136_s3 }
  0x30   :  { %p1143_p8 = por %p1142_p7, %p1141_p6 }
  0x32   :  { %p1144_p9 = pnand %p1143_p8, %p1137_p5 }
  0x34   :  { %1147 = shalt.err (!%p1144_p9)
}
  0x35   :  { %30 = dma.hbm_to_vmem [thread:$0]  %s1502_s0, 256, %s25_s15, [#allocation3], %s1248_s21, %s1248_s21, %s1249_s22  }
  0x36   :  { %s1148_s30 = scalar_lea.hbm %s1504_s2, 256 }
  0x37   :  { %p1149_p10 = scmp.ne.s32.totalorder %s1504_s2, %s1148_s30  ;;  %p1152_p11 = scmp.lt.u32.totalorder %s1148_s30, %s1504_s2 }
  0x39   :  { %p1154_p12 = pnand %p1152_p11, %p1149_p10 }
  0x3b   :  { %1157 = shalt.err (!%p1154_p12)
}
  0x3c   :  { %s1158_s14 = scalar_lea.vmem %s1346_s17, 256  ;;  %p1163_p0 = scmp.lt.s32.totalorder %s1346_s17, %s1346_s17 }
  0x3d   :  { %p1159_p13 = scmp.ne.s32.totalorder %s1346_s17, %s1158_s14  ;;  %p1164_p1 = scmp.lt.s32.totalorder %s1158_s14, %s1158_s14 }
  0x3f   :  { %p1165_p2 = por %p1164_p1, %p1163_p0 }
  0x41   :  { %p1166_p3 = pnand %p1165_p2, %p1159_p13 }
  0x43   :  { %1169 = shalt.err (!%p1166_p3)
}
  0x44   :  { %54 = dma.hbm_to_vmem [thread:$0]  %s1504_s2, 256, %s1346_s17, [#allocation6], %s1248_s21, %s1248_s21, %s1249_s22  }
  0x45   :  { %s1252_s16 = smov [#allocation10]   ;;  %s1253_s19 = smov [#allocation11]  }
  0x46   :  { %s72_s18 = sshll.u32 %s1252_s16, 4  ;;  %s90_s20 = sshll.u32 %s1253_s19, 4  ;;  %s73_s18 = int_to_ptr.vmem [resolvable:$true] %s72_s18  ;;  %s1383_s20 = int_to_ptr.vmem [resolvable:$true] %s90_s20 }
  0x47   :  { %s1170_s25 = scalar_lea.hbm %s1506_s4, 256 }
  0x48   :  { %p1171_p4 = scmp.ne.s32.totalorder %s1506_s4, %s1170_s25  ;;  %p1174_p5 = scmp.lt.u32.totalorder %s1170_s25, %s1506_s4 }
  0x4a   :  { %p1176_p6 = pnand %p1174_p5, %p1171_p4 }
  0x4c   :  { %1179 = shalt.err (!%p1176_p6)
}
  0x4d   :  { %s1180_s2 = scalar_lea.vmem %s73_s18, 256  ;;  %p1185_p8 = scmp.lt.s32.totalorder %s73_s18, %s73_s18 }
  0x4e   :  { %p1181_p7 = scmp.ne.s32.totalorder %s73_s18, %s1180_s2  ;;  %p1186_p9 = scmp.lt.s32.totalorder %s1180_s2, %s1180_s2 }
  0x50   :  { %p1187_p10 = por %p1186_p9, %p1185_p8 }
  0x52   :  { %p1188_p11 = pnand %p1187_p10, %p1181_p7 }
  0x54   :  { %1191 = shalt.err (!%p1188_p11)
}
  0x55   :  { %78 = dma.hbm_to_vmem [thread:$0]  %s1506_s4, 256, %s73_s18, [#allocation9], %s1248_s21, %s1248_s21, %s1249_s22  }
  0x56   :  { %s1192_s11 = scalar_lea.hbm %s1510_s8, 512 }
  0x57   :  { %p1193_p12 = scmp.ne.s32.totalorder %s1510_s8, %s1192_s11  ;;  %p1196_p13 = scmp.lt.u32.totalorder %s1192_s11, %s1510_s8 }
  0x59   :  { %p1198_p0 = pnand %p1196_p13, %p1193_p12 }
  0x5b   :  { %1201 = shalt.err (!%p1198_p0)
}
  0x5c   :  { %s1202_s0 = scalar_lea.vmem %s1383_s20, 512  ;;  %p1207_p2 = scmp.lt.s32.totalorder %s1383_s20, %s1383_s20 }
  0x5d   :  { %p1203_p1 = scmp.ne.s32.totalorder %s1383_s20, %s1202_s0  ;;  %p1208_p3 = scmp.lt.s32.totalorder %s1202_s0, %s1202_s0 }
  0x5f   :  { %p1209_p4 = por %p1208_p3, %p1207_p2 }
  0x61   :  { %p1210_p5 = pnand %p1209_p4, %p1203_p1 }
  0x63   :  { %1213 = shalt.err (!%p1210_p5)
}
  0x64   :  { %s1254_s4 = smov 128   ;;  %s1255_s21 = smov 8  }
  0x65   :  { %96 = dma.hbm_to_vmem [thread:$0]  %s1510_s8, 512, %s1383_s20, [#allocation12], %s1254_s4, %s1254_s4, %s1255_s21  }
  0x66   :  { %1236 = dma.done.wait [#allocation3], 256  }
  0x67   :  { %1237 = vsyncadd [#allocation3], 4294967040 }
  0x68   :  { %1238 = dma.done.wait [#allocation6], 512  }
  0x69   :  { %1239 = vsyncadd [#allocation6], 4294966784 }
  0x6a   :  { %1240 = dma.done.wait [#allocation9], 512  }
  0x6b   :  { %1241 = vsyncadd [#allocation9], 4294966784 }
  0x6c   :  { %1242 = dma.done.wait [#allocation12], 512  }
  0x6d   :  { %1243 = vsyncadd [#allocation12], 4294966784  ;;  %v1072_v0 = vld [vmem:[#allocation8] sm:$0xff]   ;;  %v1073_v1 = vld [vmem:[#allocation8 + $0x8] sm:$0xff]   ;;  %vm157_vm0 = vcmask 261120   ;;  %vm404_vm1 = vcmask 1043456  }
  0x6e   :  { %982 = vmatprep.subr.bf16.mxu1 %v1072_v0  ;;  %v1074_v2 = vld [vmem:[#allocation5] sm:$0xff]   ;;  %v1075_v3 = vld [vmem:[#allocation5 + $0x8] sm:$0xff]   ;;  %v1076_v4 = vld [vmem:[#allocation7] sm:$0xff]   ;;  %vm397_vm2 = vcmask 64512   ;;  %v1256_v52 = vmov 0.0   ;;  %vm1257_vm3 = vmmov 0  }
  0x6f   :  { %983 = vmatpush3.bf16.msra.mxu1 %v1072_v0  ;;  %986 = vmatprep.mubr.msk.bf16.mxu1 %vm157_vm0, %v1074_v2  ;;  %v1077_v5 = vld [vmem:[#allocation7 + $0x8] sm:$0xff]   ;;  %v1078_v6 = vld [vmem:[#allocation2] sm:$0xff]   ;;  %v679_v57 = vld [vmem:[#allocation11] sm:$0xff] }
  0x70   :  { %984 = vmatprep.subr.bf16.mxu1 %v1073_v1  ;;  %974 = vmatprep.subr.bf16.mxu0 %v1076_v4  ;;  %v1080_v7 = vld [vmem:[#allocation10] sm:$0xff]   ;;  %v1079_v8 = vld [vmem:[#allocation2 + $0x8] sm:$0xff]   ;;  %v680_v58 = vld [vmem:[#allocation11 + $0x8] sm:$0xff] }
  0x71   :  { %975 = vmatpush3.bf16.msra.mxu0 %v1076_v4  ;;  %978 = vmatprep.mubr.msk.bf16.mxu0 %vm157_vm0, %v1078_v6  ;;  %v1081_v9 = vld [vmem:[#allocation10 + $0x8] sm:$0xff]   ;;  %v914_v10 = vld [vmem:[%s1508_s6] ss:$0 sm:$0xff] }
  0x72   :  { %976 = vmatprep.subr.bf16.mxu0 %v1077_v5  ;;  %v921_v27 = vld [vmem:[%s1509_s7] ss:$0 sm:$0xff]  ;;  %v682_v55 = vld [vmem:[#allocation11 + $0x18] sm:$0xff] }
  0x73   :  { %985 = vmatpush3.bf16.msra.mxu1 %v1073_v1  ;;  %v681_v54 = vld [vmem:[#allocation11 + $0x10] sm:$0xff] }
  0x75   :  { %977 = vmatpush3.bf16.msra.mxu0 %v1077_v5 }
  0x76   :  { %987 = vmatmul.mubr.msk.bf16.vlgmr.msra.gmra.mrb[0].mxu1 %vm157_vm0, %v1075_v3  ;;  %990 = vmatprep.subr.bf16.mxu0 %v1080_v7 }
  0x78   :  { %979 = vmatmul.mubr.msk.bf16.vlgmr.msra.gmra.mrb[0].mxu0 %vm157_vm0, %v1079_v8 }
  0x79   :  { %991 = vmatpush3.bf16.msra.mxu0 %v1080_v7  ;;  %994 = vmatprep.mubr.msk.bf16.mxu0 %vm157_vm0, %v1074_v2  ;;  %v907_v2 = vld [vmem:[%s1507_s5] ss:$0 sm:$0xff]  ;;  %s1258_s5 = smov [#allocation13]  }
  0x7a   :  { %992 = vmatprep.subr.bf16.mxu0 %v1081_v9  ;;  %s892_s20 = sshll.u32 %s1258_s5, 4  ;;  %s893_s20 = int_to_ptr.vmem [resolvable:$true] %s892_s20 }
  0x7b   :  { %s1214_s23 = scalar_lea.vmem %s893_s20, 512  ;;  %p1219_p7 = scmp.lt.s32.totalorder %s893_s20, %s893_s20 }
  0x7c   :  { %p1215_p6 = scmp.ne.s32.totalorder %s893_s20, %s1214_s23  ;;  %p1220_p8 = scmp.lt.s32.totalorder %s1214_s23, %s1214_s23 }
  0x7d   :  { %993 = vmatpush3.bf16.msra.mxu0 %v1081_v9 }
  0x7e   :  { %p1221_p9 = por %p1220_p8, %p1219_p7 }
  0x80   :  { %995 = vmatmul.mubr.msk.bf16.vlgmr.msra.gmra.mrb[4].mxu0 %vm157_vm0, %v1075_v3  ;;  %p1222_p10 = pnand %p1221_p9, %p1215_p6 }
 0x149   :  { %v988_v11 = vpop.f32.mrb[0].mxu1 }
 0x14a   :  { %v286_v12 = vpop.f32.mrb[1].mxu1  ;;  %v295_v13 = vadd.f32 %v988_v11, %v914_v10 }
 0x14b   :  { %v989_v14 = vpop.f32.mrb[2].mxu1  ;;  %v287_v15 = vadd.f32 %v914_v10, %v286_v12  ;;  %v1429_v20 = vpop.f32.mrb[0].mxu0 }
 0x14c   :  { %v289_v16 = vpop.f32.mrb[3].mxu1  ;;  %v375_v17 = vpack.c.bf16 %v295_v13, %v295_v13  ;;  %v298_v18 = vadd.f32 %v989_v14, %v914_v10  ;;  %v1431_v22 = vpop.f32.mrb[1].mxu0 }
 0x14d   :  { %v373_v19 = vpack.c.bf16 %v287_v15, %v287_v15  ;;  %v290_v21 = vadd.f32 %v914_v10, %v289_v16  ;;  %v1433_v23 = vpop.f32.mrb[2].mxu0  ;;  %v199_v6 = vadd.f32 %v907_v2, %v1431_v22 }
 0x14e   :  { %531 = vxpose.xlu1.c.b16.start.end [1/1] (short) (narrow) %v375_v17, 32  ;;  %v1435_v24 = vpop.f32.mrb[3].mxu0  ;;  %v376_v25 = vpack.c.bf16 %v298_v18, %v298_v18 }
 0x14f   :  { %381 = vxpose.xlu0.c.b16.start.end [1/1] (short) (narrow) %v373_v19, 32  ;;  %v374_v26 = vpack.c.bf16 %v290_v21, %v290_v21 }
 0x153   :  { %605 = vxpose.xlu1.c.b16.start.end [1/1] (short) (narrow) %v376_v25, 32  ;;  %v996_v28 = vpop.f32.mrb[4].mxu0  ;;  %v699_v25 = vpack.c.bf16 %v199_v6, %v199_v6 }
 0x154   :  { %457 = vxpose.xlu0.c.b16.start.end [1/1] (short) (narrow) %v374_v26, 32  ;;  %v367_v29 = vadd.f32 %v996_v28, %v921_v27  ;;  %v358_v30 = vpop.f32.mrb[5].mxu0 }
 0x155   :  { %v359_v31 = vadd.f32 %v921_v27, %v358_v30  ;;  %v997_v32 = vpop.f32.mrb[6].mxu0  ;;  %v207_v30 = vadd.f32 %v1429_v20, %v907_v2 }
 0x156   :  { %v379_v33 = vpack.c.bf16 %v367_v29, %v367_v29  ;;  %v370_v34 = vadd.f32 %v997_v32, %v921_v27  ;;  %v361_v35 = vpop.f32.mrb[7].mxu0 }
 0x157   :  { %v377_v36 = vpack.c.bf16 %v359_v31, %v359_v31  ;;  %v362_v37 = vadd.f32 %v921_v27, %v361_v35  ;;  %v202_v31 = vadd.f32 %v907_v2, %v1435_v24 }
 0x158   :  { %v554_v38 = vsel %vm404_vm1, %v379_v33, 0  ;;  %v380_v39 = vpack.c.bf16 %v370_v34, %v370_v34 }
 0x159   :  { %v406_v40 = vsel %vm404_vm1, %v377_v36, 0  ;;  %v378_v41 = vpack.c.bf16 %v362_v37, %v362_v37  ;;  %1054 = vmatprep.subr.msk.bf16.mxu1 %vm404_vm1, %v377_v36  ;;  %v700_v20 = vpack.c.bf16 %v202_v31, %v202_v31 }
 0x15a   :  { %v628_v42 = vsel %vm404_vm1, %v380_v39, 0  ;;  %999 = vmatpush3.bf16.msra.mxu1 %v406_v40 }
 0x15b   :  { %v480_v43 = vsel %vm404_vm1, %v378_v41, 0  ;;  %1055 = vmatprep.subr.msk.bf16.mxu0 %vm404_vm1, %v378_v41  ;;  %1056 = vmatprep.subr.msk.bf16.mxu1 %vm404_vm1, %v379_v33  ;;  %v210_v41 = vadd.f32 %v1433_v23, %v907_v2 }
 0x15c   :  { %1005 = vmatpush3.bf16.msra.mxu0 %v480_v43 }
 0x15d   :  { %1057 = vmatprep.subr.msk.bf16.mxu0 %vm404_vm1, %v380_v39  ;;  %v701_v39 = vpack.c.bf16 %v207_v30, %v207_v30 }
 0x1b4   :  { %v539_v44 = vpop.trf.xlu1 }
 0x1b5   :  { %v389_v45 = vpop.trf.xlu0 }
 0x1b6   :  { %1000 = vmatprep.mubr.msk.bf16.mxu1 %vm397_vm2, %v389_v45 }
 0x1b8   :  { %v540_v47 = vpop.trf.xlu1 }
 0x1b9   :  { %v390_v46 = vpop.trf.xlu0 }
 0x1ba   :  { %1001 = vmatmul.mubr.msk.bf16.vlgmr.msra.gmra.mrb[4].mxu1 %vm397_vm2, %v390_v46 }
 0x1bb   :  { %1011 = vmatpush3.bf16.msra.mxu1 %v554_v38  ;;  %1012 = vmatprep.mubr.msk.bf16.mxu1 %vm397_vm2, %v539_v44 }
 0x1bc   :  { %v613_v49 = vpop.trf.xlu1  ;;  %1022 = vmatprep.subr.bf16.mxu1 %v1256_v52 }
 0x1bd   :  { %v465_v48 = vpop.trf.xlu0 }
 0x1be   :  { %1006 = vmatprep.mubr.msk.bf16.mxu0 %vm397_vm2, %v465_v48 }
 0x1c0   :  { %v614_v51 = vpop.trf.xlu1 }
 0x1c1   :  { %v466_v50 = vpop.trf.xlu0 }
 0x1c2   :  { %1007 = vmatmul.mubr.msk.bf16.vlgmr.msra.gmra.mrb[8].mxu0 %vm397_vm2, %v466_v50  ;;  %1013 = vmatmul.mubr.msk.bf16.vlgmr.msra.gmra.mrb[8].mxu1 %vm397_vm2, %v540_v47 }
 0x1c3   :  { %1017 = vmatpush3.bf16.msra.mxu0 %v628_v42  ;;  %1018 = vmatprep.mubr.msk.bf16.mxu0 %vm397_vm2, %v613_v49  ;;  %v702_v42 = vpack.c.bf16 %v210_v41, %v210_v41 }
 0x1c4   :  { %1030 = vmatprep.subr.bf16.mxu0 %v1256_v52  ;;  %1026 = vmatprep.mubr.msk.bf16.mxu1 %vm1257_vm3, %v1256_v52 }
 0x1ca   :  { %1019 = vmatmul.mubr.msk.bf16.vlgmr.msra.gmra.mrb[12].mxu0 %vm397_vm2, %v614_v51 }
 0x1cb   :  { %1034 = vmatprep.mubr.msk.bf16.mxu0 %vm1257_vm3, %v1256_v52 }
 0x28d   :  { %v1002_v53 = vpop.f32.mrb[4].mxu1 }
 0x28e   :  { %v442_v56 = vpop.f32.mrb[5].mxu1  ;;  %v685_v60 = vmul.f32 %v1002_v53, %v681_v54 }
 0x28f   :  { %v1003_v59 = vpop.f32.mrb[6].mxu1  ;;  %v683_v63 = vmul.f32 %v679_v57, %v442_v56 }
 0x290   :  { %v686_v61 = vmul.f32 %v1003_v59, %v682_v55  ;;  %v445_v62 = vpop.f32.mrb[7].mxu1 }
 0x291   :  { %v684_v0 = vmul.f32 %v680_v58, %v445_v62 }
 0x292   :  { %v704_v1 = vpack.c.bf16 %v686_v61, %v685_v60 }
 0x293   :  { %v703_v3 = vpack.c.bf16 %v684_v0, %v683_v63 }
 0x295   :  { %v1008_v4 = vpop.f32.mrb[8].mxu0  ;;  %v1014_v5 = vpop.f32.mrb[8].mxu1  ;;  %1023 = vmatpush3.bf16.msra.mxu1 %v703_v3 }
 0x296   :  { %v516_v7 = vpop.f32.mrb[9].mxu0  ;;  %v590_v8 = vpop.f32.mrb[9].mxu1  ;;  %1024 = vmatprep.subr.bf16.mxu1 %v1256_v52  ;;  %v689_v11 = vmul.f32 %v1008_v4, %v681_v54  ;;  %v693_v12 = vmul.f32 %v1014_v5, %v681_v54 }
 0x297   :  { %v1009_v9 = vpop.f32.mrb[10].mxu0  ;;  %v1015_v10 = vpop.f32.mrb[10].mxu1  ;;  %v687_v17 = vmul.f32 %v679_v57, %v516_v7  ;;  %v691_v18 = vmul.f32 %v679_v57, %v590_v8 }
 0x298   :  { %v690_v13 = vmul.f32 %v1009_v9, %v682_v55  ;;  %v694_v14 = vmul.f32 %v1015_v10, %v682_v55  ;;  %v519_v15 = vpop.f32.mrb[11].mxu0  ;;  %v593_v16 = vpop.f32.mrb[11].mxu1 }
 0x299   :  { %v688_v19 = vmul.f32 %v680_v58, %v519_v15  ;;  %v692_v21 = vmul.f32 %v680_v58, %v593_v16  ;;  %1025 = vmatpush3.bf16.msra.mxu1 %v704_v1 }
 0x29a   :  { %v706_v26 = vpack.c.bf16 %v690_v13, %v689_v11  ;;  %v708_v22 = vpack.c.bf16 %v694_v14, %v693_v12  ;;  %1038 = vmatprep.subr.bf16.mxu1 %v1256_v52 }
 0x29b   :  { %v705_v27 = vpack.c.bf16 %v688_v19, %v687_v17  ;;  %v707_v28 = vpack.c.bf16 %v692_v21, %v691_v18 }
 0x29c   :  { %1027 = vmatmul.mubr.msk.bf16.vlgmr.msra.gmra.mrb[12].mxu1 %vm157_vm0, %v699_v25 }
 0x29d   :  { %v1020_v29 = vpop.f32.mrb[12].mxu0  ;;  %1031 = vmatpush3.bf16.msra.mxu0 %v705_v27  ;;  %1039 = vmatpush3.bf16.msra.mxu1 %v707_v28 }
 0x29e   :  { %v664_v32 = vpop.f32.mrb[13].mxu0  ;;  %1032 = vmatprep.subr.bf16.mxu0 %v1256_v52  ;;  %1040 = vmatprep.subr.bf16.mxu1 %v1256_v52  ;;  %v697_v34 = vmul.f32 %v1020_v29, %v681_v54 }
 0x29f   :  { %v1021_v33 = vpop.f32.mrb[14].mxu0  ;;  %1042 = vmatprep.mubr.msk.bf16.mxu1 %vm1257_vm3, %v1256_v52  ;;  %v695_v37 = vmul.f32 %v679_v57, %v664_v32 }
 0x2a0   :  { %v698_v35 = vmul.f32 %v1021_v33, %v682_v55  ;;  %v667_v36 = vpop.f32.mrb[15].mxu0 }
 0x2a1   :  { %v696_v38 = vmul.f32 %v680_v58, %v667_v36  ;;  %1033 = vmatpush3.bf16.msra.mxu0 %v706_v26  ;;  %1041 = vmatpush3.bf16.msra.mxu1 %v708_v22 }
 0x2a2   :  { %v710_v40 = vpack.c.bf16 %v698_v35, %v697_v34  ;;  %1046 = vmatprep.subr.bf16.mxu0 %v1256_v52 }
 0x2a3   :  { %v709_v24 = vpack.c.bf16 %v696_v38, %v695_v37 }
 0x2a4   :  { %1035 = vmatmul.mubr.msk.bf16.vlgmr.msra.gmra.mrb[16].mxu0 %vm157_vm0, %v700_v20  ;;  %1043 = vmatmul.mubr.msk.bf16.vlgmr.msra.gmra.mrb[16].mxu1 %vm157_vm0, %v701_v39 }
 0x2a5   :  { %1047 = vmatpush3.bf16.msra.mxu0 %v709_v24  ;;  %1050 = vmatprep.mubr.msk.bf16.mxu0 %vm1257_vm3, %v1256_v52 }
 0x2a6   :  { %1048 = vmatprep.subr.bf16.mxu0 %v1256_v52 }
 0x2a9   :  { %1049 = vmatpush3.bf16.msra.mxu0 %v710_v40 }
 0x2ac   :  { %1051 = vmatmul.mubr.msk.bf16.vlgmr.msra.gmra.mrb[20].mxu0 %vm157_vm0, %v702_v42 }
 0x36f   :  { %v748_v43 = vpop.f32.mrb[12].mxu1 }
 0x370   :  { %883 = vst.msk [vmem:[#allocation13] sm:$0xff] %vm157_vm0, %v748_v43  ;;  %v1028_v44 = vpop.f32.mrb[13].mxu1 }
 0x371   :  { %v751_v45 = vpop.f32.mrb[14].mxu1 }
 0x372   :  { %v1029_v46 = vpop.f32.mrb[15].mxu1 }
 0x377   :  { %v791_v47 = vpop.f32.mrb[16].mxu0  ;;  %v834_v48 = vpop.f32.mrb[16].mxu1 }
 0x378   :  { %884 = vst.msk [vmem:[#allocation13 + $0x8] sm:$0xff] %vm157_vm0, %v791_v47  ;;  %885 = vst.msk [vmem:[#allocation13 + $0x10] sm:$0xff] %vm157_vm0, %v834_v48  ;;  %v1036_v49 = vpop.f32.mrb[17].mxu0  ;;  %v1044_v23 = vpop.f32.mrb[17].mxu1 }
 0x379   :  { %v794_v50 = vpop.f32.mrb[18].mxu0  ;;  %v837_v51 = vpop.f32.mrb[18].mxu1 }
 0x37a   :  { %v1037_v52 = vpop.f32.mrb[19].mxu0  ;;  %v1045_v53 = vpop.f32.mrb[19].mxu1 }
 0x37f   :  { %v877_v54 = vpop.f32.mrb[20].mxu0 }
 0x380   :  { %886 = vst.msk [vmem:[#allocation13 + $0x18] sm:$0xff] %vm157_vm0, %v877_v54  ;;  %v1052_v55 = vpop.f32.mrb[21].mxu0 }
 0x381   :  { %v880_v56 = vpop.f32.mrb[22].mxu0 }
 0x382   :  { %1225 = shalt.err (!%p1222_p10)
}
 0x383   :  { %s1226_s26 = scalar_lea.hbm %s1511_s9, 512 }
 0x384   :  { %p1227_p11 = scmp.ne.s32.totalorder %s1511_s9, %s1226_s26  ;;  %p1230_p12 = scmp.lt.u32.totalorder %s1226_s26, %s1511_s9 }
 0x386   :  { %p1232_p13 = pnand %p1230_p12, %p1227_p11 }
 0x388   :  { %1235 = shalt.err (!%p1232_p13)
}
 0x389   :  { %898 = dma.vmem_to_hbm [thread:$0]  %s893_s20, 512, %s1511_s9, [#allocation4], %s1254_s4, %s1254_s4, %s1255_s21   ;;  %v1053_v57 = vpop.f32.mrb[23].mxu0 }
 0x38a   :  { %1244 = dma.done.wait [#allocation4], 512  }
 0x38b   :  { %1245 = vsyncadd [#allocation4], 4294966784 }
 0x38c   :  { %902 = vsyncpa [#allocation3], 1 }
 0x38d   :  { %903 = vsyncpa [#allocation6], 1 }
 0x38e   :  { %904 = vsyncpa [#allocation9], 1 }
 0x38f   :  { %905 = vsyncpa [#allocation12], 1 }
 0x390   :  { %906 = vsyncpa [#allocation4], 1 }

</bundles_post_ra>
